<compile_context>
chip_gen: v7x
topology: tpu7x:2x2x1
jax: 0.10.0
libtpu: 0.0.40
codegen_flags: <defaults>
</compile_context>

<pallas_src>
import functools

import jax
import jax.numpy as jnp
from jax.experimental import pallas as pl
from jax.experimental.pallas import tpu as pltpu


def _fused_conv_kernel(x_ref, w2_ref, w1_ref, ml_ref, mr_ref, y_ref, t5s_ref,
                       *, W, HW, NPAIR):
    """One grid step processes NPAIR image-pairs (2*NPAIR images).

    x_ref:   (NPAIR, HW, 2J)    bf16  channels-last, flat spatial, lanes=(img, ch)
    w2_ref:  (3*2J, 2C)         bf16  stage-1 weight, rows=(tap, img, ch), pair-block-diag
    w1_ref:  (9*2C, 2*OUT)      bf16  stage-2 weight, rows=(a, b, img, c), pair-block-diag
    ml_ref:  (HW, 2C)           f32   1 where w(q) >= 1       (left-tap validity)
    mr_ref:  (HW, 2C)           f32   1 where w(q) <= W-2     (right-tap validity)
    y_ref:   (NPAIR, HW, 2*OUT) bf16  output, lanes=(img, out-ch) -> 128-lane dense stores
    t5s_ref: (2W+HW, 3*2C)      bf16  scratch: zero-haloed t5 with the three W-shifted,
                                      pre-masked copies side by side in lanes
    """
    J2 = x_ref.shape[-1]        # 128
    C2 = w2_ref.shape[-1]       # 64
    R = t5s_ref.shape[0]        # 2W + HW
    padl = W                    # top halo (multiple of 8)

    # Zero the scratch halo every grid step (scratch is uninitialized per core
    # and the "parallel" grid axis may be sharded across TensorCores).
    t5s_ref[0:padl, :] = jnp.zeros((padl, 3 * C2), jnp.bfloat16)
    t5s_ref[padl + HW:R, :] = jnp.zeros((R - padl - HW, 3 * C2), jnp.bfloat16)

    # Small, genuinely-constant operands: hoist out of the pair loop.
    w2_0 = w2_ref[0:J2, :]                # tap w-1
    w2_1 = w2_ref[J2:2 * J2, :]           # tap w
    w2_2 = w2_ref[2 * J2:3 * J2, :]       # tap w+1
    w1_0 = w1_ref[0:3 * C2, :]            # tap h-1  (192, 128)
    w1_1 = w1_ref[3 * C2:6 * C2, :]       # tap h
    w1_2 = w1_ref[6 * C2:9 * C2, :]       # tap h+1

    def shift_down(v):   # out[q] = v[q-1], 0 at q == 0   (f32 sublane shift)
        return jnp.concatenate([jnp.zeros_like(v[0:1]), v[:-1]], axis=0)

    def shift_up(v):     # out[q] = v[q+1], 0 at q == HW-1
        return jnp.concatenate([v[1:], jnp.zeros_like(v[0:1])], axis=0)

    def body(p, carry):
        ml = ml_ref[...]                 # (HW, C2) f32
        mr = mr_ref[...]                 # (HW, C2) f32
        xv = x_ref[p, :, :]              # (HW, J2) bf16, aligned full-slab read

        # ---- stage 1: depthwise 3-tap conv along W fused with the channel-pair
        #      sum; one MXU pass per tap, W-shifts applied to the small f32
        #      tap outputs (no unaligned packed-bf16 slices of x).
        u0 = jnp.dot(xv, w2_0, preferred_element_type=jnp.float32)
        u1 = jnp.dot(xv, w2_1, preferred_element_type=jnp.float32)
        u2 = jnp.dot(xv, w2_2, preferred_element_type=jnp.float32)
        t5f = shift_down(u0 * mr) + u1 + shift_up(u2 * ml)     # (HW, C2) f32

        # ---- write the three W-shifted (b = -1 / 0 / +1), pre-masked copies of
        #      t5 side by side in lanes; all stores start at row `padl` (aligned).
        t5s_ref[padl:padl + HW, 0:C2] = shift_down(t5f * mr).astype(jnp.bfloat16)
        t5s_ref[padl:padl + HW, C2:2 * C2] = t5f.astype(jnp.bfloat16)
        t5s_ref[padl:padl + HW, 2 * C2:3 * C2] = shift_up(t5f * ml).astype(jnp.bfloat16)

        # ---- stage 2: 3x3 conv as three accumulating (HW,192)x(192,128) matmuls;
        #      reads start at rows 0 / W / 2W (all multiples of 8 -> aligned).
        acc = jnp.dot(t5s_ref[0:HW, :], w1_0, preferred_element_type=jnp.float32)
        acc = acc + jnp.dot(t5s_ref[W:W + HW, :], w1_1, preferred_element_type=jnp.float32)
        acc = acc + jnp.dot(t5s_ref[2 * W:2 * W + HW, :], w1_2, preferred_element_type=jnp.float32)

        # bf16, 128-lane-dense output store.
        y_ref[p, :, :] = acc.astype(jnp.bfloat16)
        return carry

    jax.lax.fori_loop(0, NPAIR, body, 0)


def kernel_manual_0_forward(x, w1, w2, *, npair_tile=4):
    """x: (N, J, H, W) f32; w1: (OUT, G, 3, 3, K); w2: (J, 3, K). Returns (N, OUT, H, W) f32."""
    N, J, H, W = x.shape
    OUT, G, _, _, K = w1.shape
    GS = J // G
    C = G * K
    HW = H * W
    assert G * GS == J
    assert N % 2 == 0, "images are packed in pairs along lanes"
    NP = N // 2
    assert NP % npair_tile == 0
    assert W % 8 == 0, "W must be a multiple of 8 for sublane-aligned scratch reads"
    J2, C2, OUT2 = 2 * J, 2 * C, 2 * OUT

    # ---- input glue: pack image pairs along lanes (channels-last), flatten spatial, bf16.
    # TODO(synk): if the producer/consumer accept NHWC bf16 directly, both wrapper
    # transposes disappear.
    x_pair = (x.reshape(NP, 2, J, H, W)
               .transpose(0, 3, 4, 1, 2)
               .reshape(NP, HW, J2)
               .astype(jnp.bfloat16))

    eye2 = jnp.eye(2, dtype=jnp.float32)

    # ---- stage-1 weight (3*2J, 2C): rows=(tap, img, ch), cols=(img, group); the
    #      adjacent-channel-pair sum and the pair block-diagonal are fused in.
    grp = ((jnp.arange(J) // GS)[:, None] == jnp.arange(G)[None, :]).astype(jnp.float32)   # (J, G)
    base2 = (jnp.transpose(w2, (1, 0, 2))[:, :, None, :] * grp[None, :, :, None])          # (3, J, G, K)
    base2 = base2.reshape(3, J, C)
    w2m = (base2[:, None, :, None, :] * eye2[None, :, None, :, None]).reshape(3 * J2, C2)
    w2m = w2m.astype(jnp.bfloat16)

    # ---- stage-2 weight (9*2C, 2*OUT): rows=(a, b, img, c), cols=(img, out); block-
    #      diagonal over the two images of a pair.
    base1 = jnp.transpose(w1, (2, 3, 1, 4, 0)).reshape(3, 3, C, OUT)                       # (a, b, c, o)
    w1m = (base1[:, :, None, :, None, :] * eye2[None, None, :, None, :, None]).reshape(9 * C2, OUT2)
    w1m = w1m.astype(jnp.bfloat16)

    # ---- W-boundary masks, pre-broadcast (no in-kernel broadcast_in_dim), f32.
    col = jnp.arange(HW, dtype=jnp.int32) % W
    ml = jnp.broadcast_to((col >= 1)[:, None], (HW, C2)).astype(jnp.float32)
    mr = jnp.broadcast_to((col <= W - 2)[:, None], (HW, C2)).astype(jnp.float32)

    kern = functools.partial(_fused_conv_kernel, W=W, HW=HW, NPAIR=npair_tile)

    y_pair = pl.pallas_call(
        kern,
        out_shape=jax.ShapeDtypeStruct((NP, HW, OUT2), jnp.bfloat16),
        grid_spec=pltpu.PrefetchScalarGridSpec(
            num_scalar_prefetch=0,
            grid=(NP // npair_tile,),
            in_specs=[
                pl.BlockSpec((npair_tile, HW, J2), lambda n: (n, 0, 0)),
                pl.BlockSpec((3 * J2, C2), lambda n: (0, 0)),
                pl.BlockSpec((9 * C2, OUT2), lambda n: (0, 0)),
                pl.BlockSpec((HW, C2), lambda n: (0, 0)),
                pl.BlockSpec((HW, C2), lambda n: (0, 0)),
            ],
            out_specs=pl.BlockSpec((npair_tile, HW, OUT2), lambda n: (n, 0, 0)),
            scratch_shapes=[pltpu.VMEM((2 * W + HW, 3 * C2), jnp.bfloat16)],
        ),
        compiler_params=pltpu.CompilerParams(
            dimension_semantics=("parallel",),
            vmem_limit_bytes=48 * 1024 * 1024,   # ~26 MiB used at npair_tile=4; fits v7x's 64 MiB
        ),
    )(x_pair, w2m, w1m, ml, mr)

    # ---- output glue: unpack pairs, back to torch's NCHW (transpose runs on bf16).
    y = (y_pair.reshape(NP, H, W, 2, OUT)
              .transpose(0, 3, 4, 1, 2)
              .reshape(N, OUT, H, W))
    return y.astype(jnp.float32)


def reference_forward(x, w1, w2):
    """Pure-JAX f32 reference with the exact torch semantics (for verification)."""
    N, J, H, W = x.shape
    OUT, G, _, _, K = w1.shape
    GS = J // G
    xp = jnp.pad(x, ((0, 0), (0, 0), (0, 0), (1, 1)))
    t4 = jnp.zeros((N, J, H, W, K), jnp.float32)
    for i in range(3):
        t4 = t4 + xp[:, :, :, i:i + W, None] * w2[None, :, i, None, None, :]
    t5 = t4.reshape(N, G, GS, H, W, K).sum(axis=2)                    # (N, G, H, W, K)
    t5p = jnp.pad(t5, ((0, 0), (0, 0), (1, 1), (1, 1), (0, 0)))
    y = jnp.zeros((N, OUT, H, W), jnp.float32)
    for a in range(3):
        for b in range(3):
            y = y + jnp.einsum('nghwk,ogk->nohw',
                               t5p[:, :, a:a + H, b:b + W, :], w1[:, :, a, b, :])
    return y


if __name__ == "__main__":
    # Channel structure (64 in -> 32 pair-groups -> 64 out) is fixed by the
    # module's weights; batch and spatial are scaled down for the demo
    # (full scale: N=1024, H=W=56).
    N, H, W = 8, 8, 8
    J, G, GS, K, OUT = 64, 32, 2, 1, 64

    key = jax.random.PRNGKey(0)
    kx, k1, k2 = jax.random.split(key, 3)
    x = jax.random.normal(kx, (N, J, H, W), dtype=jnp.float32)
    w1 = jax.random.normal(k1, (OUT, G, 3, 3, K), dtype=jnp.float32)   # torch weights[0]
    w2 = jax.random.normal(k2, (J, 3, K), dtype=jnp.float32)           # torch weights[1]

    fwd = jax.jit(lambda a, b, c: kernel_manual_0_forward(a, b, c, npair_tile=2))
    y = jax.block_until_ready(fwd(x, w1, w2))

    y_ref = reference_forward(x, w1, w2)
    assert y.shape == (N, OUT, H, W)
    rel_err = float(jnp.max(jnp.abs(y - y_ref)) / (jnp.max(jnp.abs(y_ref)) + 1e-6))
    assert rel_err < 3e-2, f"mismatch, rel_err={rel_err}"
    print("KERNEL_OK")
</pallas_src>

<mosaic_0001>
module attributes {stable_mosaic.version = 11 : i64} {
  func.func @_fused_conv_kernel(%arg0: i32, %arg1: memref<2x64x128xbf16, #tpu.memory_space<vmem>>, %arg2: memref<384x64xbf16, #tpu.memory_space<vmem>>, %arg3: memref<576x128xbf16, #tpu.memory_space<vmem>>, %arg4: memref<64x64xf32, #tpu.memory_space<vmem>>, %arg5: memref<64x64xf32, #tpu.memory_space<vmem>>, %arg6: memref<2x64x128xbf16, #tpu.memory_space<vmem>>, %arg7: memref<80x192xbf16, #tpu.memory_space<vmem>>) attributes {dimension_semantics = [#tpu.dimension_semantics<parallel>], iteration_bounds = array<i64: 2>, scalar_prefetch = 0 : i64, scratch_operands = 1 : i64, tpu.core_type = #tpu.core_type<tc>, window_params = [{transform_indices = @transform_0, window_bounds = array<i64: 2, 64, 128>}, {pipeline_mode = #tpu.pipeline_mode<synchronous>, transform_indices = @transform_1, window_bounds = array<i64: 384, 64>}, {pipeline_mode = #tpu.pipeline_mode<synchronous>, transform_indices = @transform_2, window_bounds = array<i64: 576, 128>}, {pipeline_mode = #tpu.pipeline_mode<synchronous>, transform_indices = @transform_3, window_bounds = array<i64: 64, 64>}, {pipeline_mode = #tpu.pipeline_mode<synchronous>, transform_indices = @transform_4, window_bounds = array<i64: 64, 64>}, {transform_indices = @transform_5, window_bounds = array<i64: 2, 64, 128>}]} {
    %cst = arith.constant 0.000000e+00 : bf16
    %0 = vector.broadcast %cst : bf16 to vector<8x192xbf16>
    %c0 = arith.constant 0 : index
    %c0_0 = arith.constant 0 : index
    %1 = vector.load %arg7[%c0, %c0_0] : memref<80x192xbf16, #tpu.memory_space<vmem>>, vector<8x192xbf16>
    tpu.vector_store %arg7[%c0, %c0_0], %0 {strides = array<i32>} : memref<80x192xbf16, #tpu.memory_space<vmem>>, vector<8x192xbf16>,
    %cst_1 = arith.constant 0.000000e+00 : bf16
    %2 = vector.broadcast %cst_1 : bf16 to vector<8x192xbf16>
    %c72 = arith.constant 72 : index
    %c0_2 = arith.constant 0 : index
    %3 = vector.load %arg7[%c72, %c0_2] : memref<80x192xbf16, #tpu.memory_space<vmem>>, vector<8x192xbf16>
    tpu.vector_store %arg7[%c72, %c0_2], %2 {strides = array<i32>} : memref<80x192xbf16, #tpu.memory_space<vmem>>, vector<8x192xbf16>,
    %c0_3 = arith.constant 0 : index
    %c0_4 = arith.constant 0 : index
    %4 = vector.load %arg2[%c0_3, %c0_4] : memref<384x64xbf16, #tpu.memory_space<vmem>>, vector<128x64xbf16>
    %c128 = arith.constant 128 : index
    %c0_5 = arith.constant 0 : index
    %5 = vector.load %arg2[%c128, %c0_5] : memref<384x64xbf16, #tpu.memory_space<vmem>>, vector<128x64xbf16>
    %c256 = arith.constant 256 : index
    %c0_6 = arith.constant 0 : index
    %6 = vector.load %arg2[%c256, %c0_6] : memref<384x64xbf16, #tpu.memory_space<vmem>>, vector<128x64xbf16>
    %c0_7 = arith.constant 0 : index
    %c0_8 = arith.constant 0 : index
    %7 = vector.load %arg3[%c0_7, %c0_8] : memref<576x128xbf16, #tpu.memory_space<vmem>>, vector<192x128xbf16>
    %c192 = arith.constant 192 : index
    %c0_9 = arith.constant 0 : index
    %8 = vector.load %arg3[%c192, %c0_9] : memref<576x128xbf16, #tpu.memory_space<vmem>>, vector<192x128xbf16>
    %c384 = arith.constant 384 : index
    %c0_10 = arith.constant 0 : index
    %9 = vector.load %arg3[%c384, %c0_10] : memref<576x128xbf16, #tpu.memory_space<vmem>>, vector<192x128xbf16>
    %c0_i32 = arith.constant 0 : i32
    %c2_i32 = arith.constant 2 : i32
    %10 = arith.addi %c0_i32, %c2_i32 : i32
    %c1_i32 = arith.constant 1 : i32
    scf.for %arg8 = %c0_i32 to %10 step %c1_i32  : i32 {
      %c0_12 = arith.constant 0 : index
      %c0_13 = arith.constant 0 : index
      %11 = vector.load %arg4[%c0_12, %c0_13] : memref<64x64xf32, #tpu.memory_space<vmem>>, vector<64x64xf32>
      %c0_14 = arith.constant 0 : index
      %c0_15 = arith.constant 0 : index
      %12 = vector.load %arg5[%c0_14, %c0_15] : memref<64x64xf32, #tpu.memory_space<vmem>>, vector<64x64xf32>
      %13 = arith.index_cast %arg8 : i32 to index
      %c0_16 = arith.constant 0 : index
      %c0_17 = arith.constant 0 : index
      %14 = vector.load %arg1[%13, %c0_16, %c0_17] : memref<2x64x128xbf16, #tpu.memory_space<vmem>>, vector<1x64x128xbf16>
      %15 = vector.shape_cast %14 : vector<1x64x128xbf16> to vector<64x128xbf16>
      %cst_18 = arith.constant dense<0.000000e+00> : vector<64x64xf32>
      %16 = tpu.matmul %15, %4, %cst_18 {dimension_numbers = #tpu.dot_dimension_numbers<[1], [0], [0], [1], [0, 0, 1, 1], [], []>} : vector<64x128xbf16>, vector<128x64xbf16>, vector<64x64xf32> -> vector<64x64xf32>
      %cst_19 = arith.constant dense<0.000000e+00> : vector<64x64xf32>
      %17 = tpu.matmul %15, %5, %cst_19 {dimension_numbers = #tpu.dot_dimension_numbers<[1], [0], [0], [1], [0, 0, 1, 1], [], []>} : vector<64x128xbf16>, vector<128x64xbf16>, vector<64x64xf32> -> vector<64x64xf32>
      %cst_20 = arith.constant dense<0.000000e+00> : vector<64x64xf32>
      %18 = tpu.matmul %15, %6, %cst_20 {dimension_numbers = #tpu.dot_dimension_numbers<[1], [0], [0], [1], [0, 0, 1, 1], [], []>} : vector<64x128xbf16>, vector<128x64xbf16>, vector<64x64xf32> -> vector<64x64xf32>
      %19 = arith.mulf %16, %12 : vector<64x64xf32>
      %cst_21 = arith.constant 0.000000e+00 : f32
      %20 = vector.broadcast %cst_21 : f32 to vector<1x64xf32>
      %21 = vector.extract_strided_slice %19 {offsets = [0, 0], sizes = [63, 64], strides = [1, 1]} : vector<64x64xf32> to vector<63x64xf32>
      %22 = tpu.concatenate %20, %21 in 0 : vector<1x64xf32>, vector<63x64xf32> -> vector<64x64xf32>
      %23 = arith.addf %22, %17 : vector<64x64xf32>
      %24 = arith.mulf %18, %11 : vector<64x64xf32>
      %25 = vector.extract_strided_slice %24 {offsets = [1, 0], sizes = [63, 64], strides = [1, 1]} : vector<64x64xf32> to vector<63x64xf32>
      %cst_22 = arith.constant 0.000000e+00 : f32
      %26 = vector.broadcast %cst_22 : f32 to vector<1x64xf32>
      %27 = tpu.concatenate %25, %26 in 0 : vector<63x64xf32>, vector<1x64xf32> -> vector<64x64xf32>
      %28 = arith.addf %23, %27 : vector<64x64xf32>
      %29 = arith.mulf %28, %12 : vector<64x64xf32>
      %cst_23 = arith.constant 0.000000e+00 : f32
      %30 = vector.broadcast %cst_23 : f32 to vector<1x64xf32>
      %31 = vector.extract_strided_slice %29 {offsets = [0, 0], sizes = [63, 64], strides = [1, 1]} : vector<64x64xf32> to vector<63x64xf32>
      %32 = tpu.concatenate %30, %31 in 0 : vector<1x64xf32>, vector<63x64xf32> -> vector<64x64xf32>
      %33 = arith.truncf %32 : vector<64x64xf32> to vector<64x64xbf16>
      %c8 = arith.constant 8 : index
      %c0_24 = arith.constant 0 : index
      %34 = vector.load %arg7[%c8, %c0_24] : memref<80x192xbf16, #tpu.memory_space<vmem>>, vector<64x64xbf16>
      tpu.vector_store %arg7[%c8, %c0_24], %33 {strides = array<i32>} : memref<80x192xbf16, #tpu.memory_space<vmem>>, vector<64x64xbf16>,
      %35 = arith.truncf %28 : vector<64x64xf32> to vector<64x64xbf16>
      %c8_25 = arith.constant 8 : index
      %c64 = arith.constant 64 : index
      %36 = vector.load %arg7[%c8_25, %c64] : memref<80x192xbf16, #tpu.memory_space<vmem>>, vector<64x64xbf16>
      tpu.vector_store %arg7[%c8_25, %c64], %35 {strides = array<i32>} : memref<80x192xbf16, #tpu.memory_space<vmem>>, vector<64x64xbf16>,
      %37 = arith.mulf %28, %11 : vector<64x64xf32>
      %38 = vector.extract_strided_slice %37 {offsets = [1, 0], sizes = [63, 64], strides = [1, 1]} : vector<64x64xf32> to vector<63x64xf32>
      %cst_26 = arith.constant 0.000000e+00 : f32
      %39 = vector.broadcast %cst_26 : f32 to vector<1x64xf32>
      %40 = tpu.concatenate %38, %39 in 0 : vector<63x64xf32>, vector<1x64xf32> -> vector<64x64xf32>
      %41 = arith.truncf %40 : vector<64x64xf32> to vector<64x64xbf16>
      %c8_27 = arith.constant 8 : index
      %c128_28 = arith.constant 128 : index
      %42 = vector.load %arg7[%c8_27, %c128_28] : memref<80x192xbf16, #tpu.memory_space<vmem>>, vector<64x64xbf16>
      tpu.vector_store %arg7[%c8_27, %c128_28], %41 {strides = array<i32>} : memref<80x192xbf16, #tpu.memory_space<vmem>>, vector<64x64xbf16>,
      %c0_29 = arith.constant 0 : index
      %c0_30 = arith.constant 0 : index
      %43 = vector.load %arg7[%c0_29, %c0_30] : memref<80x192xbf16, #tpu.memory_space<vmem>>, vector<64x192xbf16>
      %cst_31 = arith.constant dense<0.000000e+00> : vector<64x128xf32>
      %44 = tpu.matmul %43, %7, %cst_31 {dimension_numbers = #tpu.dot_dimension_numbers<[1], [0], [0], [1], [0, 0, 1, 1], [], []>} : vector<64x192xbf16>, vector<192x128xbf16>, vector<64x128xf32> -> vector<64x128xf32>
      %c8_32 = arith.constant 8 : index
      %c0_33 = arith.constant 0 : index
      %45 = vector.load %arg7[%c8_32, %c0_33] : memref<80x192xbf16, #tpu.memory_space<vmem>>, vector<64x192xbf16>
      %cst_34 = arith.constant dense<0.000000e+00> : vector<64x128xf32>
      %46 = tpu.matmul %45, %8, %cst_34 {dimension_numbers = #tpu.dot_dimension_numbers<[1], [0], [0], [1], [0, 0, 1, 1], [], []>} : vector<64x192xbf16>, vector<192x128xbf16>, vector<64x128xf32> -> vector<64x128xf32>
      %47 = arith.addf %44, %46 : vector<64x128xf32>
      %c16 = arith.constant 16 : index
      %c0_35 = arith.constant 0 : index
      %48 = vector.load %arg7[%c16, %c0_35] : memref<80x192xbf16, #tpu.memory_space<vmem>>, vector<64x192xbf16>
      %cst_36 = arith.constant dense<0.000000e+00> : vector<64x128xf32>
      %49 = tpu.matmul %48, %9, %cst_36 {dimension_numbers = #tpu.dot_dimension_numbers<[1], [0], [0], [1], [0, 0, 1, 1], [], []>} : vector<64x192xbf16>, vector<192x128xbf16>, vector<64x128xf32> -> vector<64x128xf32>
      %50 = arith.addf %47, %49 : vector<64x128xf32>
      %51 = arith.truncf %50 : vector<64x128xf32> to vector<64x128xbf16>
      %52 = arith.index_cast %arg8 : i32 to index
      %c0_37 = arith.constant 0 : index
      %c0_38 = arith.constant 0 : index
      %53 = vector.load %arg6[%52, %c0_37, %c0_38] : memref<2x64x128xbf16, #tpu.memory_space<vmem>>, vector<1x64x128xbf16>
      %54 = vector.shape_cast %53 : vector<1x64x128xbf16> to vector<64x128xbf16>
      %55 = vector.shape_cast %51 : vector<64x128xbf16> to vector<1x64x128xbf16>
      tpu.vector_store %arg6[%52, %c0_37, %c0_38], %55 {strides = array<i32>} : memref<2x64x128xbf16, #tpu.memory_space<vmem>>, vector<1x64x128xbf16>,
    }
    %c2_i32_11 = arith.constant 2 : i32
    return
  }
  func.func @transform_0(%arg0: i32) -> (i32, i32, i32) {
    %c0_i32 = arith.constant 0 : i32
    %c0_i32_0 = arith.constant 0 : i32
    %c0_i32_1 = arith.constant 0 : i32
    return %arg0, %c0_i32, %c0_i32_0 : i32, i32, i32
  }
  func.func @transform_1(%arg0: i32) -> (i32, i32) {
    %c0_i32 = arith.constant 0 : i32
    %c0_i32_0 = arith.constant 0 : i32
    %c0_i32_1 = arith.constant 0 : i32
    return %c0_i32, %c0_i32_0 : i32, i32
  }
  func.func @transform_2(%arg0: i32) -> (i32, i32) {
    %c0_i32 = arith.constant 0 : i32
    %c0_i32_0 = arith.constant 0 : i32
    %c0_i32_1 = arith.constant 0 : i32
    return %c0_i32, %c0_i32_0 : i32, i32
  }
  func.func @transform_3(%arg0: i32) -> (i32, i32) {
    %c0_i32 = arith.constant 0 : i32
    %c0_i32_0 = arith.constant 0 : i32
    %c0_i32_1 = arith.constant 0 : i32
    return %c0_i32, %c0_i32_0 : i32, i32
  }
  func.func @transform_4(%arg0: i32) -> (i32, i32) {
    %c0_i32 = arith.constant 0 : i32
    %c0_i32_0 = arith.constant 0 : i32
    %c0_i32_1 = arith.constant 0 : i32
    return %c0_i32, %c0_i32_0 : i32, i32
  }
  func.func @transform_5(%arg0: i32) -> (i32, i32, i32) {
    %c0_i32 = arith.constant 0 : i32
    %c0_i32_0 = arith.constant 0 : i32
    %c0_i32_1 = arith.constant 0 : i32
    return %arg0, %c0_i32, %c0_i32_0 : i32, i32, i32
  }
}

</mosaic_0001>

<bundles_post_ra>
// kernel: _lambda_.1
= control target key start
LH: loop header
LB: loop body
LE: loop exit
PB: predicated region body
PF: predicated region fallthrough
CT: control target
= control target key end

     0   :  { %s1964_s18 = smov 0   ;;  %s3003_s0 = inlined_call_operand.vmem [shape: bf16[4,64,128], index: 0, kind: input, shape index: {}]   ;;  %s3004_s1 = inlined_call_operand.vmem [shape: bf16[384,64], index: 1, kind: input, shape index: {}]   ;;  %s3005_s2 = inlined_call_operand.vmem [shape: bf16[576,128], index: 2, kind: input, shape index: {}]   ;;  %s3006_s3 = inlined_call_operand.vmem [shape: f32[64,64], index: 3, kind: input, shape index: {}]   ;;  %s3007_s4 = inlined_call_operand.vmem [shape: f32[64,64], index: 4, kind: input, shape index: {}]   ;;  %s3008_s5 = inlined_call_operand.vmem [shape: bf16[4,64,128], index: 5, kind: output, shape index: {}]  }
   0x1 LB: > { %s1625_s19 = sadd.s32 4294967295, %s1925_s18   ;;  %p1629_p0 = scmp.ge.s32.totalorder %s1925_s18, 1  ;;  %s1925_s18 = sphi %s1964_s18, %s15_s18  }
   0x2   : > { %p189_p1 = scmp.lt.s32.totalorder %s1925_s18, 3 }
   0x4   : > { %p190_p2 = pnand %p1629_p0, %p189_p1 }
   0x5   : > { %s1630_s20 = sshll.u32 (!%p190_p2), %s1625_s19, 1  ;;  %vm235_vm0 = vcmask (!%p190_p2), 519168   ;;  %v1975_v0 = vld [vmem:[%s3004_s1] sm:$0xf] (!%p190_p2)  ;;  %vm238_vm1 = vcmask (!%p190_p2), 523268   ;;  %v1931_v1 = vmov (!%p190_p2), 0  }
   0x6   : > { %193 = sbr.rel (%p190_p2) target bundleno = 782 (0x30e), region = 40  ;;  %3011 = vst [vmem:[#allocation3_spill] sm:$0xff] (!%p190_p2), %v1975_v0  ;;  %p220_p3 = scmp.lt.s32.totalorder (!%p190_p2), %s1630_s20, 3  ;;  %234 = vst [vmem:[#allocation2] sm:$0xf] (!%p190_p2), %v1931_v1 }
   0x7   : > { %237 = vst [vmem:[#allocation2 + $0x40] sm:$0xf0] (!%p190_p2), %v1931_v1  ;;  %236 = vst.msk [vmem:[#allocation2 + $0x8] sm:$0xf] (!%p190_p2), %vm235_vm0, %v1931_v1  ;;  %v1981_v2 = vld [vmem:[%s3004_s1 + $0x4] sm:$0xf] (!%p190_p2) }
   0x8   : > { %3012 = vst [vmem:[#allocation4_spill] sm:$0xff] (!%p190_p2), %v1981_v2  ;;  %v1986_v3 = vld [vmem:[%s3004_s1 + $0x8] sm:$0xf] (!%p190_p2)  ;;  %239 = vst.msk [vmem:[#allocation2 + $0x48] sm:$0xf0] (!%p190_p2), %vm238_vm1, %v1931_v1  ;;  %s2584_s23 = smov (!%p190_p2), 0  }
   0x9   : > { %3013 = vst [vmem:[#allocation5_spill] sm:$0xff] (!%p190_p2), %v1986_v3  ;;  %v1992_v4 = vld [vmem:[%s3004_s1 + $0xc] sm:$0xf] (!%p190_p2)  ;;  %v1997_v5 = vld [vmem:[%s3004_s1 + $0x10] sm:$0xf] (!%p190_p2) }
   0xa   : > { %3014 = vst [vmem:[#allocation6_spill] sm:$0xff] (!%p190_p2), %v1992_v4  ;;  %3015 = vst [vmem:[#allocation7_spill] sm:$0xff] (!%p190_p2), %v1997_v5  ;;  %v2002_v6 = vld [vmem:[%s3004_s1 + $0x14] sm:$0xf] (!%p190_p2)  ;;  %v2007_v7 = vld [vmem:[%s3004_s1 + $0x18] sm:$0xf] (!%p190_p2) }
   0xb   : > { %3016 = vst [vmem:[#allocation8_spill] sm:$0xff] (!%p190_p2), %v2002_v6  ;;  %3017 = vst [vmem:[#allocation9_spill] sm:$0xff] (!%p190_p2), %v2007_v7  ;;  %v2012_v8 = vld [vmem:[%s3004_s1 + $0x1c] sm:$0xf] (!%p190_p2)  ;;  %v2017_v9 = vld [vmem:[%s3004_s1 + $0x20] sm:$0xf] (!%p190_p2) }
   0xc   : > { %3018 = vst [vmem:[#allocation10_spill] sm:$0xff] (!%p190_p2), %v2012_v8  ;;  %3019 = vst [vmem:[#allocation11_spill] sm:$0xff] (!%p190_p2), %v2017_v9  ;;  %v2022_v10 = vld [vmem:[%s3004_s1 + $0x24] sm:$0xf] (!%p190_p2)  ;;  %v2027_v11 = vld [vmem:[%s3004_s1 + $0x28] sm:$0xf] (!%p190_p2) }
   0xd   : > { %s3215_s20 = smov (!%p220_p3, %s1630_s20), 3  ;;  %3020 = vst [vmem:[#allocation12_spill] sm:$0xff] %v2022_v10  ;;  %3021 = vst [vmem:[#allocation13_spill] sm:$0xff] %v2027_v11  ;;  %v2032_v12 = vld [vmem:[%s3004_s1 + $0x2c] sm:$0xf] }
   0xe   : > { %s1725_s19 = sshll.u32 %s3215_s20, 5  ;;  %3022 = vst [vmem:[#allocation14_spill] sm:$0xff] %v2032_v12  ;;  %v2037_v13 = vld [vmem:[%s3004_s1 + $0x30] sm:$0xf]  ;;  %v2052_v14 = vld [vmem:[%s3004_s1 + $0x34] sm:$0xf] }
   0xf   : > { %3023 = vst [vmem:[#allocation15_spill] sm:$0xff] %v2037_v13  ;;  %s2042_s27 = scalar_lea.vmem %s3003_s0, %s1725_s19  ;;  %s2047_s30 = scalar_lea.vmem %s3008_s5, %s1725_s19  ;;  %3024 = vst [vmem:[#allocation16_spill] sm:$0xff] %v2052_v14  ;;  %v2057_v15 = vld [vmem:[%s3004_s1 + $0x38] sm:$0xf]  ;;  %v2062_v16 = vld [vmem:[%s3004_s1 + $0x3c] sm:$0xf] }
  0x10   : > { %3025 = vst [vmem:[#allocation17_spill] sm:$0xff] %v2057_v15  ;;  %3026 = vst [vmem:[#allocation18_spill] sm:$0xff] %v2062_v16  ;;  %v2067_v17 = vld [vmem:[%s3004_s1 + $0x40] sm:$0xf]  ;;  %v2072_v18 = vld [vmem:[%s3004_s1 + $0x44] sm:$0xf] }
  0x11   : > { %3027 = vst [vmem:[#allocation19_spill] sm:$0xff] %v2067_v17  ;;  %3028 = vst [vmem:[#allocation20_spill] sm:$0xff] %v2072_v18  ;;  %v2077_v19 = vld [vmem:[%s3004_s1 + $0x48] sm:$0xf]  ;;  %v2082_v20 = vld [vmem:[%s3004_s1 + $0x4c] sm:$0xf] }
  0x12   : > { %3029 = vst [vmem:[#allocation21_spill] sm:$0xff] %v2077_v19  ;;  %3030 = vst [vmem:[#allocation22_spill] sm:$0xff] %v2082_v20  ;;  %v2087_v21 = vld [vmem:[%s3004_s1 + $0x50] sm:$0xf]  ;;  %v2092_v22 = vld [vmem:[%s3004_s1 + $0x54] sm:$0xf] }
  0x13   : > { %3031 = vst [vmem:[#allocation23_spill] sm:$0xff] %v2087_v21  ;;  %3032 = vst [vmem:[#allocation24_spill] sm:$0xff] %v2092_v22  ;;  %v2097_v23 = vld [vmem:[%s3004_s1 + $0x58] sm:$0xf]  ;;  %v2102_v24 = vld [vmem:[%s3004_s1 + $0x5c] sm:$0xf] }
  0x14   : > { %3033 = vst [vmem:[#allocation25_spill] sm:$0xff] %v2097_v23  ;;  %3034 = vst [vmem:[#allocation26_spill] sm:$0xff] %v2102_v24  ;;  %v2107_v25 = vld [vmem:[%s3004_s1 + $0x60] sm:$0xf]  ;;  %v2112_v26 = vld [vmem:[%s3004_s1 + $0x64] sm:$0xf] }
  0x15   : > { %3035 = vst [vmem:[#allocation27_spill] sm:$0xff] %v2107_v25  ;;  %3036 = vst [vmem:[#allocation28_spill] sm:$0xff] %v2112_v26  ;;  %v2117_v27 = vld [vmem:[%s3004_s1 + $0x68] sm:$0xf]  ;;  %v2122_v28 = vld [vmem:[%s3004_s1 + $0x6c] sm:$0xf] }
  0x16   : > { %3037 = vst [vmem:[#allocation29_spill] sm:$0xff] %v2117_v27  ;;  %3038 = vst [vmem:[#allocation30_spill] sm:$0xff] %v2122_v28  ;;  %v2127_v29 = vld [vmem:[%s3004_s1 + $0x70] sm:$0xf]  ;;  %v2132_v30 = vld [vmem:[%s3004_s1 + $0x74] sm:$0xf] }
  0x17   : > { %3039 = vst [vmem:[#allocation31_spill] sm:$0xff] %v2127_v29  ;;  %3040 = vst [vmem:[#allocation32_spill] sm:$0xff] %v2132_v30  ;;  %v2137_v31 = vld [vmem:[%s3004_s1 + $0x78] sm:$0xf]  ;;  %v2142_v32 = vld [vmem:[%s3004_s1 + $0x7c] sm:$0xf] }
  0x18   : > { %3041 = vst [vmem:[#allocation33_spill] sm:$0xff] %v2137_v31  ;;  %3042 = vst [vmem:[#allocation34_spill] sm:$0xff] %v2142_v32  ;;  %v2147_v33 = vld [vmem:[%s3004_s1 + $0x80] sm:$0xf]  ;;  %v2152_v34 = vld [vmem:[%s3004_s1 + $0x84] sm:$0xf] }
  0x19   : > { %3043 = vst [vmem:[#allocation35_spill] sm:$0xff] %v2147_v33  ;;  %3044 = vst [vmem:[#allocation36_spill] sm:$0xff] %v2152_v34  ;;  %v2157_v35 = vld [vmem:[%s3004_s1 + $0x88] sm:$0xf]  ;;  %v2162_v36 = vld [vmem:[%s3004_s1 + $0x8c] sm:$0xf] }
  0x1a   : > { %3045 = vst [vmem:[#allocation37_spill] sm:$0xff] %v2157_v35  ;;  %3046 = vst [vmem:[#allocation38_spill] sm:$0xff] %v2162_v36  ;;  %v2167_v37 = vld [vmem:[%s3004_s1 + $0x90] sm:$0xf]  ;;  %v2172_v38 = vld [vmem:[%s3004_s1 + $0x94] sm:$0xf] }
  0x1b   : > { %3047 = vst [vmem:[#allocation39_spill] sm:$0xff] %v2167_v37  ;;  %3048 = vst [vmem:[#allocation40_spill] sm:$0xff] %v2172_v38  ;;  %v2177_v39 = vld [vmem:[%s3004_s1 + $0x98] sm:$0xf]  ;;  %v2182_v40 = vld [vmem:[%s3004_s1 + $0x9c] sm:$0xf] }
  0x1c   : > { %v2187_v41 = vld [vmem:[%s3004_s1 + $0xa0] sm:$0xf]  ;;  %v2192_v42 = vld [vmem:[%s3004_s1 + $0xa4] sm:$0xf]  ;;  %v2197_v43 = vld [vmem:[%s3004_s1 + $0xa8] sm:$0xf] }
  0x1d   : > { %v2202_v44 = vld [vmem:[%s3004_s1 + $0xac] sm:$0xf]  ;;  %v2207_v45 = vld [vmem:[%s3004_s1 + $0xb0] sm:$0xf]  ;;  %v2212_v46 = vld [vmem:[%s3004_s1 + $0xb4] sm:$0xf] }
  0x1e   : > { %v2217_v47 = vld [vmem:[%s3004_s1 + $0xb8] sm:$0xf]  ;;  %v2222_v48 = vld [vmem:[%s3004_s1 + $0xbc] sm:$0xf]  ;;  %v2227_v49 = vld [vmem:[%s3005_s2] sm:$0xf] }
  0x1f   : > { %v2232_v50 = vld [vmem:[%s3005_s2 + $0x4] sm:$0xf]  ;;  %v2237_v51 = vld [vmem:[%s3005_s2 + $0x8] sm:$0xf]  ;;  %v2242_v52 = vld [vmem:[%s3005_s2 + $0xc] sm:$0xf] }
  0x20   : > { %v2247_v53 = vld [vmem:[%s3005_s2 + $0x10] sm:$0xf]  ;;  %v2252_v54 = vld [vmem:[%s3005_s2 + $0x14] sm:$0xf]  ;;  %v2257_v55 = vld [vmem:[%s3005_s2 + $0x18] sm:$0xf] }
  0x21   : > { %3049 = vst [vmem:[#allocation41_spill] sm:$0xff] %v2257_v55  ;;  %v2262_v56 = vld [vmem:[%s3005_s2 + $0x1c] sm:$0xf]  ;;  %v2267_v57 = vld [vmem:[%s3005_s2 + $0x20] sm:$0xf] }
  0x22   : > { %3050 = vst [vmem:[#allocation42_spill] sm:$0xff] %v2262_v56  ;;  %3051 = vst [vmem:[#allocation43_spill] sm:$0xff] %v2267_v57  ;;  %v2272_v58 = vld [vmem:[%s3005_s2 + $0x24] sm:$0xf]  ;;  %v2277_v59 = vld [vmem:[%s3005_s2 + $0x28] sm:$0xf] }
  0x23   : > { %3052 = vst [vmem:[#allocation44_spill] sm:$0xff] %v2272_v58  ;;  %3053 = vst [vmem:[#allocation45_spill] sm:$0xff] %v2277_v59  ;;  %v2282_v60 = vld [vmem:[%s3005_s2 + $0x2c] sm:$0xf]  ;;  %v2287_v61 = vld [vmem:[%s3005_s2 + $0x30] sm:$0xf] }
  0x24   : > { %3054 = vst [vmem:[#allocation46_spill] sm:$0xff] %v2282_v60  ;;  %3055 = vst [vmem:[#allocation47_spill] sm:$0xff] %v2287_v61  ;;  %v2292_v62 = vld [vmem:[%s3005_s2 + $0x34] sm:$0xf]  ;;  %v2297_v63 = vld [vmem:[%s3005_s2 + $0x38] sm:$0xf] }
  0x25   : > { %3056 = vst [vmem:[#allocation48_spill] sm:$0xff] %v2292_v62  ;;  %3057 = vst [vmem:[#allocation49_spill] sm:$0xff] %v2297_v63  ;;  %v2302_v1 = vld [vmem:[%s3005_s2 + $0x3c] sm:$0xf]  ;;  %v2307_v59 = vld [vmem:[%s3005_s2 + $0x40] sm:$0xf] }
  0x26   : > { %3058 = vst [vmem:[#allocation50_spill] sm:$0xff] %v2302_v1  ;;  %3059 = vst [vmem:[#allocation51_spill] sm:$0xff] %v2307_v59  ;;  %v2312_v61 = vld [vmem:[%s3005_s2 + $0x44] sm:$0xf]  ;;  %v2317_v62 = vld [vmem:[%s3005_s2 + $0x48] sm:$0xf] }
  0x27   : > { %3060 = vst [vmem:[#allocation52_spill] sm:$0xff] %v2312_v61  ;;  %3061 = vst [vmem:[#allocation53_spill] sm:$0xff] %v2317_v62  ;;  %v2322_v63 = vld [vmem:[%s3005_s2 + $0x4c] sm:$0xf]  ;;  %v2327_v1 = vld [vmem:[%s3005_s2 + $0x50] sm:$0xf] }
  0x28   : > { %3062 = vst [vmem:[#allocation54_spill] sm:$0xff] %v2322_v63  ;;  %3063 = vst [vmem:[#allocation55_spill] sm:$0xff] %v2327_v1  ;;  %v2332_v59 = vld [vmem:[%s3005_s2 + $0x54] sm:$0xf]  ;;  %v2337_v61 = vld [vmem:[%s3005_s2 + $0x58] sm:$0xf] }
  0x29   : > { %3064 = vst [vmem:[#allocation56_spill] sm:$0xff] %v2332_v59  ;;  %3065 = vst [vmem:[#allocation57_spill] sm:$0xff] %v2337_v61  ;;  %v2342_v62 = vld [vmem:[%s3005_s2 + $0x5c] sm:$0xf]  ;;  %v2347_v63 = vld [vmem:[%s3005_s2 + $0x60] sm:$0xf] }
  0x2a   : > { %3066 = vst [vmem:[#allocation58_spill] sm:$0xff] %v2342_v62  ;;  %v2352_v1 = vld [vmem:[%s3005_s2 + $0x64] sm:$0xf]  ;;  %v2357_v59 = vld [vmem:[%s3005_s2 + $0x68] sm:$0xf] }
  0x2b   : > { %3067 = vst [vmem:[#allocation59_spill] sm:$0xff] %v2352_v1  ;;  %v2362_v61 = vld [vmem:[%s3005_s2 + $0x6c] sm:$0xf]  ;;  %v2367_v62 = vld [vmem:[%s3005_s2 + $0x70] sm:$0xf] }
  0x2c   : > { %3068 = vst [vmem:[#allocation60_spill] sm:$0xff] %v2367_v62  ;;  %v2372_v60 = vld [vmem:[%s3005_s2 + $0x74] sm:$0xf]  ;;  %v2377_v57 = vld [vmem:[%s3005_s2 + $0x78] sm:$0xf] }
  0x2d   : > { %3069 = vst [vmem:[#allocation61_spill] sm:$0xff] %v2377_v57  ;;  %v2382_v58 = vld [vmem:[%s3005_s2 + $0x7c] sm:$0xf]  ;;  %v2387_v55 = vld [vmem:[%s3005_s2 + $0x80] sm:$0xf] }
  0x2e   : > { %3070 = vst [vmem:[#allocation62_spill] sm:$0xff] %v2382_v58  ;;  %3071 = vst [vmem:[#allocation63_spill] sm:$0xff] %v2387_v55  ;;  %v2392_v56 = vld [vmem:[%s3005_s2 + $0x84] sm:$0xf]  ;;  %v2397_v62 = vld [vmem:[%s3005_s2 + $0x88] sm:$0xf] }
  0x2f   : > { %3072 = vst [vmem:[#allocation64_spill] sm:$0xff] %v2392_v56  ;;  %3073 = vst [vmem:[#allocation65_spill] sm:$0xff] %v2397_v62  ;;  %v2402_v57 = vld [vmem:[%s3005_s2 + $0x8c] sm:$0xf]  ;;  %v2407_v58 = vld [vmem:[%s3005_s2 + $0x90] sm:$0xf] }
  0x30   : > { %3074 = vst [vmem:[#allocation66_spill] sm:$0xff] %v2402_v57  ;;  %3075 = vst [vmem:[#allocation67_spill] sm:$0xff] %v2407_v58  ;;  %v2412_v55 = vld [vmem:[%s3005_s2 + $0x94] sm:$0xf]  ;;  %v2417_v56 = vld [vmem:[%s3005_s2 + $0x98] sm:$0xf] }
  0x31   : > { %3076 = vst [vmem:[#allocation68_spill] sm:$0xff] %v2412_v55  ;;  %3077 = vst [vmem:[#allocation69_spill] sm:$0xff] %v2417_v56  ;;  %v2422_v62 = vld [vmem:[%s3005_s2 + $0x9c] sm:$0xf]  ;;  %v2427_v57 = vld [vmem:[%s3005_s2 + $0xa0] sm:$0xf] }
  0x32   : > { %3078 = vst [vmem:[#allocation70_spill] sm:$0xff] %v2422_v62  ;;  %3079 = vst [vmem:[#allocation71_spill] sm:$0xff] %v2427_v57  ;;  %v2432_v58 = vld [vmem:[%s3005_s2 + $0xa4] sm:$0xf]  ;;  %v2437_v55 = vld [vmem:[%s3005_s2 + $0xa8] sm:$0xf] }
  0x33   : > { %3080 = vst [vmem:[#allocation72_spill] sm:$0xff] %v2432_v58  ;;  %3081 = vst [vmem:[#allocation73_spill] sm:$0xff] %v2437_v55  ;;  %v2442_v56 = vld [vmem:[%s3005_s2 + $0xac] sm:$0xf]  ;;  %v2447_v62 = vld [vmem:[%s3005_s2 + $0xb0] sm:$0xf] }
  0x34   : > { %3082 = vst [vmem:[#allocation74_spill] sm:$0xff] %v2442_v56  ;;  %3083 = vst [vmem:[#allocation75_spill] sm:$0xff] %v2447_v62  ;;  %v2452_v57 = vld [vmem:[%s3005_s2 + $0xb4] sm:$0xf]  ;;  %v2457_v58 = vld [vmem:[%s3005_s2 + $0xb8] sm:$0xf] }
  0x35   : > { %3084 = vst [vmem:[#allocation76_spill] sm:$0xff] %v2452_v57  ;;  %3085 = vst [vmem:[#allocation77_spill] sm:$0xff] %v2457_v58  ;;  %v2462_v55 = vld [vmem:[%s3005_s2 + $0xbc] sm:$0xf]  ;;  %v2467_v56 = vld [vmem:[%s3005_s2 + $0xc0] sm:$0xf] }
  0x36   : > { %3086 = vst [vmem:[#allocation78_spill] sm:$0xff] %v2462_v55  ;;  %3087 = vst [vmem:[#allocation79_spill] sm:$0xff] %v2467_v56  ;;  %v2472_v62 = vld [vmem:[%s3005_s2 + $0xc4] sm:$0xf]  ;;  %v2477_v57 = vld [vmem:[%s3005_s2 + $0xc8] sm:$0xf] }
  0x37   : > { %3088 = vst [vmem:[#allocation80_spill] sm:$0xff] %v2472_v62  ;;  %3089 = vst [vmem:[#allocation81_spill] sm:$0xff] %v2477_v57  ;;  %v2482_v58 = vld [vmem:[%s3005_s2 + $0xcc] sm:$0xf]  ;;  %v2487_v55 = vld [vmem:[%s3005_s2 + $0xd0] sm:$0xf] }
  0x38   : > { %3090 = vst [vmem:[#allocation82_spill] sm:$0xff] %v2482_v58  ;;  %3091 = vst [vmem:[#allocation83_spill] sm:$0xff] %v2487_v55  ;;  %v2492_v56 = vld [vmem:[%s3005_s2 + $0xd4] sm:$0xf]  ;;  %v2497_v62 = vld [vmem:[%s3005_s2 + $0xd8] sm:$0xf] }
  0x39   : > { %3092 = vst [vmem:[#allocation84_spill] sm:$0xff] %v2492_v56  ;;  %3093 = vst [vmem:[#allocation85_spill] sm:$0xff] %v2497_v62  ;;  %v2502_v57 = vld [vmem:[%s3005_s2 + $0xdc] sm:$0xf]  ;;  %v2507_v58 = vld [vmem:[%s3005_s2 + $0xe0] sm:$0xf] }
  0x3a   : > { %3094 = vst [vmem:[#allocation86_spill] sm:$0xff] %v2502_v57  ;;  %3095 = vst [vmem:[#allocation87_spill] sm:$0xff] %v2507_v58  ;;  %v2512_v55 = vld [vmem:[%s3005_s2 + $0xe4] sm:$0xf]  ;;  %v2517_v56 = vld [vmem:[%s3005_s2 + $0xe8] sm:$0xf] }
  0x3b   : > { %3096 = vst [vmem:[#allocation88_spill] sm:$0xff] %v2512_v55  ;;  %3097 = vst [vmem:[#allocation89_spill] sm:$0xff] %v2517_v56  ;;  %v2522_v62 = vld [vmem:[%s3005_s2 + $0xec] sm:$0xf]  ;;  %v2527_v57 = vld [vmem:[%s3005_s2 + $0xf0] sm:$0xf] }
  0x3c   : > { %3098 = vst [vmem:[#allocation90_spill] sm:$0xff] %v2522_v62  ;;  %3099 = vst [vmem:[#allocation91_spill] sm:$0xff] %v2527_v57  ;;  %v2532_v58 = vld [vmem:[%s3005_s2 + $0xf4] sm:$0xf]  ;;  %v2537_v55 = vld [vmem:[%s3005_s2 + $0xf8] sm:$0xf] }
  0x3d   : > { %3100 = vst [vmem:[#allocation92_spill] sm:$0xff] %v2532_v58  ;;  %3101 = vst [vmem:[#allocation93_spill] sm:$0xff] %v2537_v55  ;;  %v2542_v56 = vld [vmem:[%s3005_s2 + $0xfc] sm:$0xf]  ;;  %v2547_v62 = vld [vmem:[%s3005_s2 + $0x100] sm:$0xf] }
  0x3e   : > { %3102 = vst [vmem:[#allocation94_spill] sm:$0xff] %v2542_v56  ;;  %3103 = vst [vmem:[#allocation95_spill] sm:$0xff] %v2547_v62  ;;  %v2552_v57 = vld [vmem:[%s3005_s2 + $0x104] sm:$0xf]  ;;  %v2557_v58 = vld [vmem:[%s3005_s2 + $0x108] sm:$0xf] }
  0x3f   : > { %3104 = vst [vmem:[#allocation96_spill] sm:$0xff] %v2552_v57  ;;  %3105 = vst [vmem:[#allocation97_spill] sm:$0xff] %v2557_v58  ;;  %v2562_v55 = vld [vmem:[%s3005_s2 + $0x10c] sm:$0xf]  ;;  %v2567_v56 = vld [vmem:[%s3005_s2 + $0x110] sm:$0xf] }
  0x40   : > { %3106 = vst [vmem:[#allocation98_spill] sm:$0xff] %v2567_v56  ;;  %v2572_v62 = vld [vmem:[%s3005_s2 + $0x114] sm:$0xf]  ;;  %v2577_v57 = vld [vmem:[%s3005_s2 + $0x118] sm:$0xf] }
  0x41   : > { %3107 = vst [vmem:[#allocation99_spill] sm:$0xff] %v2572_v62  ;;  %3108 = vst [vmem:[#allocation100_spill] sm:$0xff] %v2577_v57  ;;  %v2582_v58 = vld [vmem:[%s3005_s2 + $0x11c] sm:$0xf] }
  0x42   : > { %3109 = vst [vmem:[#allocation101_spill] sm:$0xff] %v2582_v58 }
  0x43 LB: >> { %v3110_v2 = vld [vmem:[#allocation4_spill] sm:$0xff]  ;;  %v3111_v0 = vld [vmem:[#allocation3_spill] sm:$0xff]  ;;  %v3112_v4 = vld [vmem:[#allocation6_spill] sm:$0xff]  ;;  %s1727_s24 = sshll.u32 %s1929_s23, 5  ;;  %vm772_vm2 = vcmask 1040384   ;;  %vm821_vm3 = vcmask 1046528   ;;  %s1929_s23 = sphi %s2584_s23, %s365_s23  }
  0x44   : >> { %v1642_v56 = vcombine.low %v3111_v0, %v3110_v2  ;;  %v3113_v3 = vld [vmem:[#allocation5_spill] sm:$0xff]  ;;  %v3114_v18 = vld [vmem:[#allocation20_spill] sm:$0xff]  ;;  %v3115_v17 = vld [vmem:[#allocation19_spill] sm:$0xff]  ;;  %s2601_s25 = scalar_lea.vmem %s2042_s27, %s1727_s24  ;;  %vm902_vm4 = vcmask 1043456   ;;  %vm916_vm5 = vcmask 523264   ;;  %s1933_s14 = smov 64  }
  0x45   : >> { %v1643_v57 = vcombine.low %v3113_v3, %v3112_v4  ;;  %v1650_v62 = vcombine.low %v3115_v17, %v3114_v18  ;;  %v3116_v20 = vld [vmem:[#allocation22_spill] sm:$0xff]  ;;  %v3117_v19 = vld [vmem:[#allocation21_spill] sm:$0xff]  ;;  %v3118_v6 = vld [vmem:[#allocation8_spill] sm:$0xff]  ;;  %vm951_vm6 = vcmask 1048068   ;;  %vm953_vm7 = vcmask 1048064   ;;  %s1549_s15 = scalar_lea.vmem %s2047_s30, %s1727_s24  ;;  %s365_s23 = sadd.s32 1, %s1929_s23  }
  0x46   : >> { %v1651_v58 = vcombine.low %v3117_v19, %v3116_v20  ;;  %1796 = vmatprep.subr.bf16.mxu0 %v1642_v56  ;;  %v3119_v5 = vld [vmem:[#allocation7_spill] sm:$0xff]  ;;  %v3120_v22 = vld [vmem:[#allocation24_spill] sm:$0xff]  ;;  %v1911_v3 = vld [vmem:[%s2601_s25] sm:$0xff]   ;;  %vm957_vm8 = vcmask 1043968   ;;  %p362_p4 = scmp.ge.s32.totalorder %s365_s23, 2  }
  0x47   : >> { %1820 = vmatprep.subr.bf16.mxu1 %v1650_v62  ;;  %1797 = vmatpush3.bf16.msra.mxu0 %v1642_v56  ;;  %v1644_v0 = vcombine.low %v3119_v5, %v3118_v6  ;;  %v3121_v21 = vld [vmem:[#allocation23_spill] sm:$0xff]  ;;  %v3122_v8 = vld [vmem:[#allocation10_spill] sm:$0xff]  ;;  %v3123_v7 = vld [vmem:[#allocation9_spill] sm:$0xff] }
  0x48   : >> { %1821 = vmatpush3.bf16.msra.mxu1 %v1650_v62  ;;  %1798 = vmatprep.subr.bf16.mxu0 %v1643_v57  ;;  %v1652_v2 = vcombine.low %v3121_v21, %v3120_v22  ;;  %v1645_v56 = vcombine.low %v3123_v7, %v3122_v8  ;;  %v3124_v24 = vld [vmem:[#allocation26_spill] sm:$0xff]  ;;  %v3125_v23 = vld [vmem:[#allocation25_spill] sm:$0xff]  ;;  %v3126_v10 = vld [vmem:[#allocation12_spill] sm:$0xff] }
  0x49   : >> { %1822 = vmatprep.subr.bf16.mxu1 %v1651_v58  ;;  %1812 = vmatprep.mubr.bf16.mxu0 %v1911_v3  ;;  %v1653_v62 = vcombine.low %v3125_v23, %v3124_v24  ;;  %v3127_v9 = vld [vmem:[#allocation11_spill] sm:$0xff]  ;;  %v3128_v26 = vld [vmem:[#allocation28_spill] sm:$0xff]  ;;  %v3130_v12 = vld [vmem:[#allocation14_spill] sm:$0xff] }
  0x4a   : >> { %1836 = vmatprep.mubr.bf16.mxu1 %v1911_v3  ;;  %v1646_v4 = vcombine.low %v3127_v9, %v3126_v10  ;;  %v3129_v25 = vld [vmem:[#allocation27_spill] sm:$0xff]  ;;  %v3131_v11 = vld [vmem:[#allocation13_spill] sm:$0xff]  ;;  %v3132_v28 = vld [vmem:[#allocation30_spill] sm:$0xff] }
  0x4b   : >> { %1799 = vmatpush3.bf16.msra.mxu0 %v1643_v57  ;;  %v1654_v5 = vcombine.low %v3129_v25, %v3128_v26  ;;  %v1647_v57 = vcombine.low %v3131_v11, %v3130_v12  ;;  %v3133_v27 = vld [vmem:[#allocation29_spill] sm:$0xff]  ;;  %v3134_v14 = vld [vmem:[#allocation16_spill] sm:$0xff]  ;;  %v3135_v13 = vld [vmem:[#allocation15_spill] sm:$0xff] }
  0x4c   : >> { %1823 = vmatpush3.bf16.msra.mxu1 %v1651_v58  ;;  %1800 = vmatprep.subr.bf16.mxu0 %v1644_v0  ;;  %v1655_v58 = vcombine.low %v3133_v27, %v3132_v28  ;;  %v3136_v30 = vld [vmem:[#allocation32_spill] sm:$0xff]  ;;  %v3137_v29 = vld [vmem:[#allocation31_spill] sm:$0xff]  ;;  %v3138_v16 = vld [vmem:[#allocation18_spill] sm:$0xff] }
  0x4d   : >> { %1824 = vmatprep.subr.bf16.mxu1 %v1652_v2  ;;  %v3139_v15 = vld [vmem:[#allocation17_spill] sm:$0xff]  ;;  %v3140_v32 = vld [vmem:[#allocation34_spill] sm:$0xff]  ;;  %v3142_v34 = vld [vmem:[#allocation36_spill] sm:$0xff] }
  0x4e   : >> { %v3141_v31 = vld [vmem:[#allocation33_spill] sm:$0xff]  ;;  %v3143_v33 = vld [vmem:[#allocation35_spill] sm:$0xff]  ;;  %v3144_v36 = vld [vmem:[#allocation38_spill] sm:$0xff] }
  0x4f   : >> { %1801 = vmatpush3.bf16.msra.mxu0 %v1644_v0  ;;  %v1648_v0 = vcombine.low %v3135_v13, %v3134_v14  ;;  %v3145_v35 = vld [vmem:[#allocation37_spill] sm:$0xff]  ;;  %v3146_v38 = vld [vmem:[#allocation40_spill] sm:$0xff]  ;;  %v3147_v37 = vld [vmem:[#allocation39_spill] sm:$0xff] }
  0x50   : >> { %1825 = vmatpush3.bf16.msra.mxu1 %v1652_v2  ;;  %1802 = vmatprep.subr.bf16.mxu0 %v1645_v56  ;;  %v1656_v2 = vcombine.low %v3137_v29, %v3136_v30  ;;  %v3148_v1 = vld [vmem:[#allocation59_spill] sm:$0xff]  ;;  %v3154_v7 = vld [vmem:[#allocation44_spill] sm:$0xff]  ;;  %v370_v29 = vld [vmem:[%s3006_s3 + $0x20] sm:$0xff] }
  0x51   : >> { %1826 = vmatprep.subr.bf16.mxu1 %v1653_v62 }
  0x53   : >> { %1803 = vmatpush3.bf16.msra.mxu0 %v1645_v56  ;;  %v1649_v56 = vcombine.low %v3139_v15, %v3138_v16  ;;  %v2731_v16 = vld [vmem:[%s3007_s4 + $0x30] sm:$0xff] }
  0x54   : >> { %1827 = vmatpush3.bf16.msra.mxu1 %v1653_v62  ;;  %1804 = vmatprep.subr.bf16.mxu0 %v1646_v4  ;;  %v1912_v62 = vld [vmem:[%s2601_s25 + $0x8] sm:$0xff]  }
  0x55   : >> { %1828 = vmatprep.subr.bf16.mxu1 %v1654_v5 }
  0x57   : >> { %1805 = vmatpush3.bf16.msra.mxu0 %v1646_v4  ;;  %v1657_v4 = vcombine.low %v3141_v31, %v3140_v32  ;;  %v371_v31 = vld [vmem:[%s3006_s3 + $0x28] sm:$0xff] }
  0x58   : >> { %1829 = vmatpush3.bf16.msra.mxu1 %v1654_v5  ;;  %1806 = vmatprep.subr.bf16.mxu0 %v1647_v57  ;;  %v1658_v5 = vcombine.low %v3143_v33, %v3142_v34 }
  0x59   : >> { %1830 = vmatprep.subr.bf16.mxu1 %v1655_v58 }
  0x5b   : >> { %1807 = vmatpush3.bf16.msra.mxu0 %v1647_v57  ;;  %v1913_v57 = vld [vmem:[%s2601_s25 + $0x10] sm:$0xff]  }
  0x5c   : >> { %1831 = vmatpush3.bf16.msra.mxu1 %v1655_v58  ;;  %1808 = vmatprep.subr.bf16.mxu0 %v1648_v0  ;;  %v1659_v58 = vcombine.low %v3145_v35, %v3144_v36 }
  0x5d   : >> { %1832 = vmatprep.subr.bf16.mxu1 %v1656_v2 }
  0x5f   : >> { %1809 = vmatpush3.bf16.msra.mxu0 %v1648_v0  ;;  %v1660_v0 = vcombine.low %v3147_v37, %v3146_v38 }
  0x60   : >> { %1833 = vmatpush3.bf16.msra.mxu1 %v1656_v2  ;;  %1810 = vmatprep.subr.bf16.mxu0 %v1649_v56  ;;  %v1914_v2 = vld [vmem:[%s2601_s25 + $0x18] sm:$0xff]  }
  0x61   : >> { %1834 = vmatprep.subr.bf16.mxu1 %v1657_v4 }
  0x63   : >> { %1811 = vmatpush3.bf16.msra.mxu0 %v1649_v56  ;;  %v1661_v56 = vcombine.low %v2177_v39, %v2182_v40 }
  0x64   : >> { %1835 = vmatpush3.bf16.msra.mxu1 %v1657_v4  ;;  %1844 = vmatprep.subr.bf16.mxu0 %v1658_v5  ;;  %v1662_v4 = vcombine.low %v2187_v41, %v2192_v42 }
  0x66   : >> { %1813 = vmatmul.mubr.bf16.vlgmr.msra.gmra.mrb[0].mxu0 %v1912_v62 }
  0x67   : >> { %1837 = vmatmul.mubr.bf16.vlgmr.msra.gmra.mrb[0].mxu1 %v1912_v62  ;;  %1845 = vmatpush3.bf16.msra.mxu0 %v1658_v5  ;;  %v1663_v5 = vcombine.low %v2197_v43, %v2202_v44 }
  0x68   : >> { %1816 = vmatprep.mubr.bf16.mxu0 %v1913_v57  ;;  %1846 = vmatprep.subr.bf16.mxu0 %v1659_v58 }
  0x69   : >> { %1840 = vmatprep.mubr.bf16.mxu1 %v1913_v57 }
  0x6b   : >> { %1847 = vmatpush3.bf16.msra.mxu0 %v1659_v58  ;;  %v1664_v58 = vcombine.low %v2207_v45, %v2212_v46 }
  0x6c   : >> { %1848 = vmatprep.subr.bf16.mxu0 %v1660_v0 }
  0x6e   : >> { %1817 = vmatmul.mubr.bf16.gmra.mrb[4].mxu0 %v1914_v2 }
  0x6f   : >> { %1841 = vmatmul.mubr.bf16.gmra.mrb[4].mxu1 %v1914_v2  ;;  %1849 = vmatpush3.bf16.msra.mxu0 %v1660_v0  ;;  %v1665_v0 = vcombine.low %v2217_v47, %v2222_v48 }
  0x70   : >> { %1860 = vmatprep.mubr.bf16.mxu0 %v1911_v3  ;;  %1850 = vmatprep.subr.bf16.mxu0 %v1661_v56  ;;  %v1682_v3 = vcombine.low %v2227_v49, %v2232_v50 }
  0x73   : >> { %1851 = vmatpush3.bf16.msra.mxu0 %v1661_v56  ;;  %v3009_v56 = vmov 0  }
  0x74   : >> { %1852 = vmatprep.subr.bf16.mxu0 %v1662_v4  ;;  %1301 = vmatprep.subr.bf16.mxu1 %v3009_v56 }
  0x75   : >> { %1302 = vmatpush1.bf16.msra.mxu1 %v1682_v3  ;;  %v3151_v3 = vld [vmem:[#allocation41_spill] sm:$0xff] }
  0x76   : >> { %1303 = vmatprep.subr.bf16.mxu1 %v3009_v56 }
  0x77   : >> { %1853 = vmatpush3.bf16.msra.mxu0 %v1662_v4  ;;  %v1666_v4 = vcombine.low %v2347_v63, %v3148_v1  ;;  %v3152_v1 = vld [vmem:[#allocation62_spill] sm:$0xff] }
  0x78   : >> { %1854 = vmatprep.subr.bf16.mxu0 %v1663_v5 }
  0x7b   : >> { %1855 = vmatpush3.bf16.msra.mxu0 %v1663_v5  ;;  %v1683_v5 = vcombine.low %v2237_v51, %v2242_v52 }
  0x7c   : >> { %1856 = vmatprep.subr.bf16.mxu0 %v1664_v58 }
  0x7d   : >> { %1304 = vmatpush1.bf16.msra.mxu1 %v1683_v5  ;;  %v3153_v5 = vld [vmem:[#allocation61_spill] sm:$0xff] }
  0x7e   : >> { %1305 = vmatprep.subr.bf16.mxu1 %v3009_v56  ;;  %v1669_v6 = vcombine.low %v3153_v5, %v3152_v1  ;;  %v3160_v1 = vld [vmem:[#allocation66_spill] sm:$0xff] }
  0x7f   : >> { %1857 = vmatpush3.bf16.msra.mxu0 %v1664_v58 }
  0x80   : >> { %1858 = vmatprep.subr.bf16.mxu0 %v1665_v0 }
  0x83   : >> { %1859 = vmatpush3.bf16.msra.mxu0 %v1665_v0  ;;  %v3150_v0 = vld [vmem:[#allocation42_spill] sm:$0xff] }
  0x84   : >> { %1152 = vmatprep.subr.bf16.mxu0 %v3009_v56 }
  0x86   : >> { %1861 = vmatmul.mubr.bf16.vlgmr.msra.gmra.mrb[8].mxu0 %v1912_v62  ;;  %v1667_v62 = vcombine.low %v2357_v59, %v2362_v61 }
  0x87   : >> { %1864 = vmatprep.mubr.bf16.mxu0 %v1913_v57  ;;  %1153 = vmatpush1.bf16.msra.mxu0 %v1666_v4  ;;  %v1684_v57 = vcombine.low %v2247_v53, %v2252_v54  ;;  %v1685_v4 = vcombine.low %v3151_v3, %v3150_v0  ;;  %v3158_v0 = vld [vmem:[#allocation46_spill] sm:$0xff] }
  0x88   : >> { %1154 = vmatprep.subr.bf16.mxu0 %v3009_v56 }
  0x89   : >> { %1306 = vmatpush1.bf16.msra.mxu1 %v1684_v57  ;;  %v3157_v57 = vld [vmem:[#allocation63_spill] sm:$0xff] }
  0x8a   : >> { %1307 = vmatprep.subr.bf16.mxu1 %v3009_v56 }
  0x8b   : >> { %1155 = vmatpush1.bf16.msra.mxu0 %v1667_v62  ;;  %v3155_v62 = vld [vmem:[#allocation43_spill] sm:$0xff] }
  0x8c   : >> { %1156 = vmatprep.subr.bf16.mxu0 %v3009_v56  ;;  %v1686_v8 = vcombine.low %v3155_v62, %v3154_v7  ;;  %v3162_v7 = vld [vmem:[#allocation48_spill] sm:$0xff] }
  0x8d   : >> { %1308 = vmatpush1.bf16.msra.mxu1 %v1685_v4  ;;  %v3161_v4 = vld [vmem:[#allocation65_spill] sm:$0xff] }
  0x8e   : >> { %1865 = vmatmul.mubr.bf16.gmra.mrb[12].mxu0 %v1914_v2  ;;  %v3149_v2 = vld [vmem:[#allocation60_spill] sm:$0xff]  ;;  %1309 = vmatprep.subr.bf16.mxu1 %v3009_v56  ;;  %v1671_v5 = vcombine.low %v3161_v4, %v3160_v1  ;;  %v3168_v1 = vld [vmem:[#allocation70_spill] sm:$0xff] }
  0x8f   : >> { %v1668_v58 = vcombine.low %v3149_v2, %v2372_v60  ;;  %v3156_v2 = vld [vmem:[#allocation64_spill] sm:$0xff] }
  0x90   : >> { %v1670_v9 = vcombine.low %v3157_v57, %v3156_v2  ;;  %v3164_v2 = vld [vmem:[#allocation68_spill] sm:$0xff] }
  0x91   : >> { %1157 = vmatpush1.bf16.msra.mxu0 %v1668_v58  ;;  %1310 = vmatpush1.bf16.msra.mxu1 %v1686_v8  ;;  %v3159_v58 = vld [vmem:[#allocation45_spill] sm:$0xff]  ;;  %v3165_v8 = vld [vmem:[#allocation67_spill] sm:$0xff] }
  0x92   : >> { %1158 = vmatprep.subr.bf16.mxu0 %v3009_v56  ;;  %v1687_v3 = vcombine.low %v3159_v58, %v3158_v0  ;;  %1311 = vmatprep.subr.bf16.mxu1 %v3009_v56  ;;  %v1672_v57 = vcombine.low %v3165_v8, %v3164_v2  ;;  %v3166_v0 = vld [vmem:[#allocation50_spill] sm:$0xff]  ;;  %v3173_v2 = vld [vmem:[#allocation53_spill] sm:$0xff] }
  0x95   : >> { %1159 = vmatpush1.bf16.msra.mxu0 %v1669_v6  ;;  %1312 = vmatpush1.bf16.msra.mxu1 %v1687_v3  ;;  %v3163_v6 = vld [vmem:[#allocation47_spill] sm:$0xff]  ;;  %v3169_v3 = vld [vmem:[#allocation69_spill] sm:$0xff] }
  0x96   : >> { %1160 = vmatprep.subr.bf16.mxu0 %v3009_v56  ;;  %v1688_v62 = vcombine.low %v3163_v6, %v3162_v7  ;;  %1313 = vmatprep.subr.bf16.mxu1 %v3009_v56  ;;  %v1673_v4 = vcombine.low %v3169_v3, %v3168_v1  ;;  %v3170_v7 = vld [vmem:[#allocation52_spill] sm:$0xff] }
  0x99   : >> { %1161 = vmatpush1.bf16.msra.mxu0 %v1670_v9  ;;  %1314 = vmatpush1.bf16.msra.mxu1 %v1688_v62  ;;  %v3167_v9 = vld [vmem:[#allocation49_spill] sm:$0xff]  ;;  %v3172_v62 = vld [vmem:[#allocation54_spill] sm:$0xff] }
  0x9a   : >> { %1162 = vmatprep.subr.bf16.mxu0 %v3009_v56  ;;  %v1689_v58 = vcombine.low %v3167_v9, %v3166_v0  ;;  %1315 = vmatprep.subr.bf16.mxu1 %v3009_v56  ;;  %v1691_v8 = vcombine.low %v3173_v2, %v3172_v62  ;;  %v2711_v0 = vld [vmem:[%s3007_s4] sm:$0xff] }
  0x9d   : >> { %1163 = vmatpush1.bf16.msra.mxu0 %v1671_v5  ;;  %1316 = vmatpush1.bf16.msra.mxu1 %v1689_v58  ;;  %v3171_v5 = vld [vmem:[#allocation51_spill] sm:$0xff]  ;;  %v2716_v58 = vld [vmem:[%s3007_s4 + $0x18] sm:$0xff] }
  0x9e   : >> { %1164 = vmatprep.subr.bf16.mxu0 %v3009_v56  ;;  %v1690_v6 = vcombine.low %v3171_v5, %v3170_v7  ;;  %1317 = vmatprep.subr.bf16.mxu1 %v3009_v56  ;;  %v2722_v7 = vld [vmem:[%s3007_s4 + $0x8] sm:$0xff] }
  0xa1   : >> { %1165 = vmatpush1.bf16.msra.mxu0 %v1672_v57  ;;  %1318 = vmatpush1.bf16.msra.mxu1 %v1690_v6  ;;  %v2706_v57 = vld [vmem:[%s3007_s4 + $0x10] sm:$0xff] }
  0xa2   : >> { %1166 = vmatprep.subr.bf16.mxu0 %v3009_v56  ;;  %1319 = vmatprep.subr.bf16.mxu1 %v3009_v56 }
  0xa5   : >> { %1167 = vmatpush1.bf16.msra.mxu0 %v1673_v4  ;;  %1320 = vmatpush1.bf16.msra.mxu1 %v1691_v8 }
  0xa6   : >> { %1168 = vmatprep.subr.bf16.mxu0 %v3009_v56  ;;  %1321 = vmatprep.subr.bf16.mxu1 %v3009_v56 }
 0x139   : >> { %v1814_v9 = vpop.f32.mrb[0].mxu0 }
 0x13a   : >> { %v1838_v1 = vpop.f32.mrb[0].mxu1  ;;  %v758_v3 = vmul.f32 %v1814_v9, %v2706_v57  ;;  %v499_v4 = vpop.f32.mrb[1].mxu0 }
 0x13b   : >> { %v612_v5 = vpop.f32.mrb[1].mxu1  ;;  %v756_v6 = vmul.f32 %v499_v4, %v2711_v0  ;;  %v1815_v62 = vpop.f32.mrb[2].mxu0 }
 0x13c   : >> { %v1839_v2 = vpop.f32.mrb[2].mxu1  ;;  %v776_v8 = vrot.slane %v758_v3, 7  ;;  %v759_v56 = vmul.f32 %v1815_v62, %v2716_v58  ;;  %v502_v10 = vpop.f32.mrb[3].mxu0  ;;  %v2739_v62 = vld [vmem:[%s3007_s4 + $0x20] sm:$0xff] }
 0x13d   : >> { %v615_v11 = vpop.f32.mrb[3].mxu1  ;;  %v773_v12 = vrot.slane %v756_v6, 7  ;;  %v757_v9 = vmul.f32 %v502_v10, %v2722_v7 }
 0x13e   : >> { %v778_v13 = vrot.slane %v759_v56, 7 }
 0x13f   : >> { %v774_v14 = vrot.slane %v757_v9, 7  ;;  %v796_v15 = vsel %vm772_vm2, 0.0, %v773_v12 }
 0x140   : >> { %v2733_v4 = vadd.f32 %v796_v15, %v612_v5  ;;  %v779_v3 = vsel %vm772_vm2, %v776_v8, %v778_v13  ;;  %v2748_v15 = vld [vmem:[%s3007_s4 + $0x38] sm:$0xff] }
 0x141   : >> { %v777_v10 = vsel %vm772_vm2, %v774_v14, %v776_v8  ;;  %v2742_v56 = vadd.f32 %v1839_v2, %v779_v3  ;;  %v1818_v6 = vpop.f32.mrb[4].mxu0  ;;  %v775_v9 = vsel %vm772_vm2, %v773_v12, %v774_v14  ;;  %v2754_v2 = vld [vmem:[%s3007_s4 + $0x28] sm:$0xff] }
 0x142   : >> { %v1842_v17 = vpop.f32.mrb[4].mxu1  ;;  %v799_v5 = vadd.f32 %v1838_v1, %v777_v10  ;;  %v762_v18 = vmul.f32 %v1818_v6, %v2731_v16  ;;  %v798_v19 = vadd.f32 %v775_v9, %v615_v11  ;;  %v515_v20 = vpop.f32.mrb[5].mxu0 }
 0x143   : >> { %v628_v21 = vpop.f32.mrb[5].mxu1  ;;  %v760_v8 = vmul.f32 %v515_v20, %v2739_v62  ;;  %v1819_v12 = vpop.f32.mrb[6].mxu0 }
 0x144   : >> { %v1843_v14 = vpop.f32.mrb[6].mxu1  ;;  %v784_v3 = vrot.slane %v762_v18, 7  ;;  %v763_v22 = vmul.f32 %v1819_v12, %v2748_v15  ;;  %v518_v23 = vpop.f32.mrb[7].mxu0 }
 0x145   : >> { %v631_v24 = vpop.f32.mrb[7].mxu1  ;;  %v780_v1 = vrot.slane %v760_v8, 7  ;;  %v761_v10 = vmul.f32 %v518_v23, %v2754_v2  ;;  %v368_v23 = vld [vmem:[%s3006_s3 + $0x10] sm:$0xff] }
 0x146   : >> { %v786_v11 = vrot.slane %v763_v22, 7  ;;  %v369_v22 = vld [vmem:[%s3006_s3 + $0x18] sm:$0xff] }
 0x147   : >> { %v781_v6 = vsel %vm772_vm2, %v778_v13, %v780_v1  ;;  %v782_v9 = vrot.slane %v761_v10, 7  ;;  %v366_v13 = vld [vmem:[%s3006_s3] sm:$0xff] }
 0x148   : >> { %v2760_v25 = vadd.f32 %v781_v6, %v628_v21  ;;  %v787_v26 = vsel %vm772_vm2, %v784_v3, %v786_v11 }
 0x149   : >> { %v785_v20 = vsel %vm772_vm2, %v782_v9, %v784_v3  ;;  %v804_v27 = vadd.f32 %v1843_v14, %v787_v26  ;;  %v783_v18 = vsel %vm772_vm2, %v780_v1, %v782_v9 }
 0x14a   : >> { %v803_v28 = vadd.f32 %v1842_v17, %v785_v20  ;;  %v2765_v12 = vadd.f32 %v783_v18, %v631_v24  ;;  %v367_v17 = vld [vmem:[%s3006_s3 + $0x8] sm:$0xff]  ;;  %v372_v18 = vld [vmem:[%s3006_s3 + $0x30] sm:$0xff] }
 0x159   : >> { %v1862_v21 = vpop.f32.mrb[8].mxu0 }
 0x15a   : >> { %v807_v8 = vmul.f32 %v1862_v21, %v368_v23  ;;  %v725_v26 = vpop.f32.mrb[9].mxu0 }
 0x15b   : >> { %v805_v24 = vmul.f32 %v725_v26, %v366_v13  ;;  %v1863_v14 = vpop.f32.mrb[10].mxu0 }
 0x15c   : >> { %v808_v3 = vmul.f32 %v1863_v14, %v369_v22  ;;  %v728_v1 = vpop.f32.mrb[11].mxu0  ;;  %v825_v11 = vrot.slane %v807_v8, 1 }
 0x15d   : >> { %v806_v10 = vmul.f32 %v728_v1, %v367_v17  ;;  %v822_v9 = vrot.slane %v805_v24, 1  ;;  %v373_v24 = vld [vmem:[%s3006_s3 + $0x38] sm:$0xff] }
 0x15e   : >> { %v827_v6 = vrot.slane %v808_v3, 1 }
 0x15f   : >> { %v823_v20 = vrot.slane %v806_v10, 1 }
 0x160   : >> { %v828_v21 = vsel %vm821_vm3, %v825_v11, %v827_v6 }
 0x161   : >> { %v2786_v26 = vadd.f32 %v828_v21, %v799_v5  ;;  %v824_v14 = vsel %vm821_vm3, %v822_v9, %v823_v20  ;;  %v826_v1 = vsel %vm821_vm3, %v823_v20, %v825_v11  ;;  %v1866_v8 = vpop.f32.mrb[12].mxu0 }
 0x162   : >> { %v847_v3 = vadd.f32 %v826_v1, %v798_v19  ;;  %v811_v10 = vmul.f32 %v1866_v8, %v372_v18  ;;  %v741_v30 = vpop.f32.mrb[13].mxu0  ;;  %v846_v32 = vadd.f32 %v824_v14, %v2733_v4 }
 0x163   : >> { %v2799_v5 = vmul.f32 %v2786_v26, %v2706_v57  ;;  %v961_v11 = vmul.f32 %v2786_v26, %v368_v23  ;;  %v809_v9 = vmul.f32 %v741_v30, %v370_v29  ;;  %v1867_v20 = vpop.f32.mrb[14].mxu0 }
 0x164   : >> { %v2803_v21 = vmul.f32 %v847_v3, %v2722_v7  ;;  %v2805_v19 = vmul.f32 %v847_v3, %v367_v17  ;;  %v833_v1 = vrot.slane %v811_v10, 1  ;;  %v812_v8 = vmul.f32 %v1867_v20, %v373_v24  ;;  %v744_v33 = vpop.f32.mrb[15].mxu0 }
 0x165   : >> { %v978_v34 = vrot.slane %v961_v11, 1  ;;  %v829_v35 = vrot.slane %v809_v9, 1  ;;  %v810_v36 = vmul.f32 %v744_v33, %v371_v31  ;;  %v873_v4 = vrot.slane %v2799_v5, 7 }
 0x166   : >> { %v976_v57 = vrot.slane %v2805_v19, 1  ;;  %v835_v14 = vrot.slane %v812_v8, 1  ;;  %v921_v37 = vpack.c.bf16 %v847_v3, %v846_v32  ;;  %v871_v30 = vrot.slane %v2803_v21, 7  ;;  %v3181_v21 = vld [vmem:[#allocation73_spill] sm:$0xff] }
 0x167   : >> { %v830_v23 = vsel %vm821_vm3, %v827_v6, %v829_v35  ;;  %v831_v7 = vrot.slane %v810_v36, 1  ;;  %v959_v38 = vmul.f32 %v846_v32, %v366_v13 }
 0x168   : >> { %v979_v17 = vsel %vm821_vm3, %v976_v57, %v978_v34  ;;  %v849_v10 = vadd.f32 %v830_v23, %v2742_v56  ;;  %v836_v11 = vsel %vm821_vm3, %v833_v1, %v835_v14  ;;  %v845_v33 = vsel %vm821_vm3, %v835_v14, 0.0 }
 0x169   : >> { %v852_v9 = vadd.f32 %v836_v11, %v803_v28  ;;  %v853_v20 = vadd.f32 %v845_v33, %v804_v27  ;;  %v832_v19 = vsel %vm821_vm3, %v829_v35, %v831_v7  ;;  %v834_v3 = vsel %vm821_vm3, %v831_v7, %v833_v1 }
 0x16a   : >> { %v2818_v8 = vmul.f32 %v849_v10, %v2716_v58  ;;  %v962_v36 = vmul.f32 %v849_v10, %v369_v22  ;;  %v850_v13 = vadd.f32 %v832_v19, %v2760_v25  ;;  %v851_v6 = vadd.f32 %v834_v3, %v2765_v12 }
 0x16b   : >> { %v2823_v56 = vmul.f32 %v852_v9, %v2731_v16  ;;  %v965_v23 = vmul.f32 %v852_v9, %v372_v18  ;;  %v966_v14 = vmul.f32 %v853_v20, %v373_v24  ;;  %v854_v27 = vmul.f32 %v846_v32, %v2711_v0 }
 0x16c   : >> { %v980_v28 = vrot.slane %v962_v36, 1  ;;  %v2827_v35 = vmul.f32 %v853_v20, %v2748_v15  ;;  %v2830_v1 = vmul.f32 %v850_v13, %v2739_v62  ;;  %v2833_v58 = vmul.f32 %v851_v6, %v2754_v2 }
 0x16d   : >> { %v875_v25 = vrot.slane %v2818_v8, 7  ;;  %v986_v16 = vrot.slane %v965_v23, 1  ;;  %v988_v22 = vrot.slane %v966_v14, 1  ;;  %v963_v15 = vmul.f32 %v850_v13, %v370_v29 }
 0x16e   : >> { %v981_v18 = vsel %vm821_vm3, %v978_v34, %v980_v28  ;;  %v877_v32 = vrot.slane %v2830_v1, 7  ;;  %v964_v2 = vmul.f32 %v851_v6, %v371_v31  ;;  %v929_v7 = vrot.slane %v921_v37, 4 }
 0x16f   : >> { %v989_v24 = vsel %vm821_vm3, %v986_v16, %v988_v22  ;;  %v998_v62 = vsel %vm821_vm3, %v988_v22, 0.0  ;;  %v982_v33 = vrot.slane %v963_v15, 1  ;;  %v975_v19 = vrot.slane %v959_v38, 1 }
 0x170   : >> { %v1002_v11 = vpack.c.bf16 %v998_v62, %v989_v24  ;;  %v922_v3 = vpack.c.bf16 %v849_v10, %v2786_v26  ;;  %v984_v36 = vrot.slane %v964_v2, 1  ;;  %936 = vrot.lane.b32.xlu0 %v929_v7, %s1933_s14  ;;  %v923_v34 = vpack.c.bf16 %v851_v6, %v850_v13  ;;  %v3174_v62 = vld [vmem:[#allocation56_spill] sm:$0xff]  ;;  %v3175_v2 = vld [vmem:[#allocation55_spill] sm:$0xff] }
 0x171   : >> { %v924_v23 = vpack.c.bf16 %v853_v20, %v852_v9  ;;  %v870_v14 = vrot.slane %v854_v27, 7  ;;  %v983_v12 = vsel %vm821_vm3, %v980_v28, %v982_v33  ;;  %v977_v22 = vsel %vm821_vm3, %v975_v19, %v976_v57 }
 0x172   : >> { %v1012_v29 = vrot.slane %v1002_v11, 4  ;;  %v930_v0 = vrot.slane %v922_v3, 4  ;;  %v985_v31 = vsel %vm821_vm3, %v982_v33, %v984_v36  ;;  %v987_v37 = vsel %vm821_vm3, %v984_v36, %v986_v16  ;;  %v3176_v11 = vld [vmem:[#allocation72_spill] sm:$0xff]  ;;  %v3177_v33 = vld [vmem:[#allocation71_spill] sm:$0xff] }
 0x173   : >> { %v1000_v38 = vpack.c.bf16 %v983_v12, %v981_v18  ;;  %v999_v15 = vpack.c.bf16 %v979_v17, %v977_v22  ;;  %v1001_v26 = vpack.c.bf16 %v987_v37, %v985_v31  ;;  %v932_v13 = vrot.slane %v923_v34, 4  ;;  %v3178_v34 = vld [vmem:[#allocation58_spill] sm:$0xff] }
 0x174   : >> { %1023 = vst.msk [vmem:[#allocation2 + $0x48] sm:$0xf] %vm235_vm0, %v1012_v29  ;;  %v931_v10 = vsel %vm902_vm4, %v929_v7, %v930_v0  ;;  %v934_v9 = vrot.slane %v924_v23, 4  ;;  %v872_v57 = vsel %vm772_vm2, %v870_v14, %v871_v30  ;;  %v893_v27 = vsel %vm772_vm2, 0.0, %v870_v14  ;;  %v3179_v23 = vld [vmem:[#allocation57_spill] sm:$0xff]  ;;  %v3180_v22 = vld [vmem:[#allocation74_spill] sm:$0xff] }
 0x175   : >> { %v1008_v20 = vrot.slane %v1000_v38, 4  ;;  %v1007_v6 = vrot.slane %v999_v15, 4  ;;  %938 = vrot.lane.b32.xlu0 %v931_v10, %s1933_s14  ;;  %v1010_v28 = vrot.slane %v1001_v26, 4  ;;  %v933_v17 = vsel %vm902_vm4, %v930_v0, %v932_v13 }
 0x176   : >> { %v935_v12 = vsel %vm902_vm4, %v932_v13, %v934_v9  ;;  %v894_v16 = vpack.c.bf16 %v872_v57, %v893_v27  ;;  %v883_v18 = vrot.slane %v2827_v35, 7  ;;  %940 = vrot.lane.b32.xlu1 %v933_v17, %s1933_s14  ;;  %v1692_v7 = vcombine.low %v3175_v2, %v3174_v62  ;;  %v3189_v2 = vld [vmem:[#allocation78_spill] sm:$0xff] }
 0x177   : >> { %1019 = vst.msk [vmem:[#allocation2 + $0x8] sm:$0xf0] %vm238_vm1, %v1007_v6  ;;  %v1009_v24 = vsel %vm902_vm4, %v1007_v6, %v1008_v20  ;;  %v1674_v19 = vcombine.low %v3177_v33, %v3176_v11  ;;  %v1011_v3 = vsel %vm902_vm4, %v1008_v20, %v1010_v28  ;;  %v1013_v0 = vsel %vm902_vm4, %v1010_v28, %v1012_v29  ;;  %v3187_v28 = vld [vmem:[#allocation76_spill] sm:$0xff] }
 0x178   : >> { %1020 = vst.msk [vmem:[#allocation2 + $0x18] sm:$0xff] %vm916_vm5, %v1009_v24  ;;  %v903_v36 = vrot.slane %v894_v16, 4  ;;  %v874_v35 = vsel %vm772_vm2, %v871_v30, %v873_v4  ;;  %1021 = vst.msk [vmem:[#allocation2 + $0x28] sm:$0xff] %vm916_vm5, %v1011_v3  ;;  %1322 = vmatpush1.bf16.msra.mxu1 %v1692_v7  ;;  %v1693_v14 = vcombine.low %v3179_v23, %v3178_v34  ;;  %v3182_v30 = vmov 0   ;;  %v3190_v7 = vld [vmem:[#allocation77_spill] sm:$0xff]  ;;  %v3191_v3 = vld [vmem:[#allocation80_spill] sm:$0xff] }
 0x179   : >> { %1022 = vst.msk [vmem:[#allocation2 + $0x38] sm:$0xff] %vm916_vm5, %v1013_v0  ;;  %944 = vrot.lane.b32.xlu0 %v934_v9, %s1933_s14  ;;  %v876_v29 = vsel %vm772_vm2, %v873_v4, %v875_v25  ;;  %v1675_v31 = vcombine.low %v3181_v21, %v3180_v22  ;;  %1169 = vmatpush1.bf16.msra.mxu0 %v1674_v19  ;;  %v3183_v15 = vrot.slane %v2833_v58, 7  ;;  %v3184_v26 = vrot.slane %v2823_v56, 7  ;;  %v3188_v58 = vld [vmem:[#allocation75_spill] sm:$0xff]  ;;  %v3194_v22 = vld [vmem:[#allocation81_spill] sm:$0xff] }
 0x17a   : >> { %915 = vst.msk [vmem:[#allocation2] sm:$0xf0] %vm238_vm1, %v903_v36  ;;  %1323 = vmatprep.subr.bf16.mxu1 %v3182_v30  ;;  %v895_v37 = vpack.c.bf16 %v876_v29, %v874_v35  ;;  %v878_v38 = vsel %vm772_vm2, %v875_v25, %v877_v32  ;;  %942 = vrot.lane.b32.xlu1 %v935_v12, %s1933_s14  ;;  %v3192_v0 = vld [vmem:[#allocation79_spill] sm:$0xff]  ;;  %v3193_v29 = vld [vmem:[#allocation82_spill] sm:$0xff] }
 0x17b   : >> { %v880_v5 = vsel %vm772_vm2, %v877_v32, %v3183_v15  ;;  %1170 = vmatprep.subr.bf16.mxu0 %v3182_v30  ;;  %v3185_v10 = vmov %v3183_v15  ;;  %v3186_v8 = vmov %v3184_v26  ;;  %v1676_v17 = vcombine.low %v3188_v58, %v3187_v28  ;;  %v3199_v28 = vld [vmem:[#allocation88_spill] sm:$0xff]  ;;  %v3200_v58 = vld [vmem:[#allocation87_spill] sm:$0xff] }
 0x17c   : >> { %v896_v4 = vpack.c.bf16 %v880_v5, %v878_v38  ;;  %v882_v13 = vsel %vm772_vm2, %v3185_v10, %v3184_v26  ;;  %v884_v25 = vsel %vm772_vm2, %v3186_v8, %v883_v18  ;;  %v904_v9 = vrot.slane %v895_v37, 4  ;;  %1324 = vmatpush1.bf16.msra.mxu1 %v1693_v14  ;;  %v3195_v26 = vld [vmem:[#allocation84_spill] sm:$0xff]  ;;  %v3196_v10 = vld [vmem:[#allocation83_spill] sm:$0xff] }
 0x17d   : >> { %v897_v20 = vpack.c.bf16 %v884_v25, %v882_v13  ;;  %1171 = vmatpush1.bf16.msra.mxu0 %v1675_v31  ;;  %1443 = vmatprep.subr.bf16.mxu1 %v3182_v30  ;;  %v1677_v11 = vcombine.low %v3190_v7, %v3189_v2  ;;  %v1699_v21 = vcombine.low %v3194_v22, %v3193_v29 }
 0x17e   : >> { %v906_v1 = vrot.slane %v896_v4, 4  ;;  %v1025_v32 = vld [vmem:[#allocation2 + $0x8] sm:$0xff]  ;;  %v905_v57 = vsel %vm902_vm4, %v903_v36, %v904_v9  ;;  %1172 = vmatprep.subr.bf16.mxu0 %v3182_v30  ;;  %v1698_v36 = vcombine.low %v3192_v0, %v3191_v3  ;;  %v1700_v13 = vcombine.low %v3196_v10, %v3195_v26  ;;  %v3210_v26 = vld [vmem:[#allocation99_spill] sm:$0xff] }
 0x17f   : >> { %v1033_v6 = vld [vmem:[#allocation2 + $0x8] sm:$0xf0]  ;;  %v908_v27 = vrot.slane %v897_v20, 4  ;;  %1694 = vmatprep.mubr.msk.bf16.mxu1 %vm916_vm5, %v1025_v32  ;;  %v2912_v56 = vld [vmem:[#allocation2 + $0x18] sm:$0xff]  ;;  %917 = vst.msk [vmem:[#allocation2 + $0x10] sm:$0xff] %vm916_vm5, %v905_v57  ;;  %v3198_v32 = vld [vmem:[#allocation85_spill] sm:$0xff] }
 0x180   : >> { %v907_v12 = vsel %vm902_vm4, %v904_v9, %v906_v1  ;;  %v1049_v16 = vrot.slane %v1033_v6, 4  ;;  %v1050_v18 = vrot.slane %v2912_v56, 4  ;;  %v2931_v14 = vld [vmem:[#allocation2 + $0x28] sm:$0xff]  ;;  %v1031_v20 = vld [vmem:[#allocation2 + $0x38] sm:$0xff] }
 0x181   : >> { %918 = vst.msk [vmem:[#allocation2 + $0x20] sm:$0xff] %vm916_vm5, %v907_v12  ;;  %v909_v24 = vsel %vm902_vm4, %v906_v1, %v908_v27  ;;  %1173 = vmatpush1.bf16.msra.mxu0 %v1676_v17  ;;  %v1054_v15 = vrot.slane %v2931_v14, 4  ;;  %v3197_v1 = vld [vmem:[#allocation86_spill] sm:$0xff]  ;;  %v1702_v17 = vcombine.low %v3200_v58, %v3199_v28 }
 0x182   : >> { %920 = vst.msk [vmem:[#allocation2 + $0x40] sm:$0xf] %vm235_vm0, %v908_v27  ;;  %v1051_v62 = vsel %vm902_vm4, %v1049_v16, %v1050_v18  ;;  %1174 = vmatprep.subr.bf16.mxu0 %v3182_v30  ;;  %v1701_v6 = vcombine.low %v3198_v32, %v3197_v1  ;;  %v1058_v27 = vrot.slane %v1031_v20, 4  ;;  %v3211_v10 = vld [vmem:[#allocation98_spill] sm:$0xff] }
 0x183   : >> { %919 = vst.msk [vmem:[#allocation2 + $0x30] sm:$0xff] %vm916_vm5, %v909_v24  ;;  %1678 = vmatprep.mubr.msk.bf16.mxu0 %vm916_vm5, %v1051_v62  ;;  %v1055_v25 = vsel %vm902_vm4, %v1050_v18, %v1054_v15  ;;  %v3201_v24 = vld [vmem:[#allocation90_spill] sm:$0xff]  ;;  %v3202_v62 = vld [vmem:[#allocation89_spill] sm:$0xff] }
 0x184   : >> { %v1059_v16 = vsel %vm902_vm4, %v1054_v15, %v1058_v27  ;;  %v1703_v2 = vcombine.low %v3202_v62, %v3201_v24  ;;  %v1367_v32 = vld [vmem:[#allocation2 + $0x48] sm:$0xff] }
 0x185   : >> { %1175 = vmatpush1.bf16.msra.mxu0 %v1677_v11  ;;  %v1035_v11 = vld [vmem:[#allocation2 + $0x48] sm:$0xf] }
 0x186   : >> { %v1062_v0 = vrot.slane %v1035_v11, 4 }
 0x1e2   : >> { %v937_v33 = vpop.permute.xlu0 %936 }
 0x1e3   : >> { %952 = vst.msk [vmem:[#allocation2] sm:$0xf0] %vm951_vm6, %v937_v33  ;;  %v3203_v33 = vld [vmem:[#allocation92_spill] sm:$0xff] }
 0x1e7   : >> { %v939_v19 = vpop.permute.xlu0 %938 }
 0x1e8   : >> { %954 = vst.msk [vmem:[#allocation2 + $0x10] sm:$0xff] %vm953_vm7, %v939_v19  ;;  %v941_v35 = vpop.permute.xlu1 %940  ;;  %v3204_v19 = vld [vmem:[#allocation91_spill] sm:$0xff] }
 0x1e9   : >> { %955 = vst.msk [vmem:[#allocation2 + $0x20] sm:$0xff] %vm953_vm7, %v941_v35  ;;  %v1704_v3 = vcombine.low %v3204_v19, %v3203_v33  ;;  %v1063_v35 = vsel %vm902_vm4, %v1058_v27, %v1062_v0 }
 0x1ea   : >> { %v1024_v34 = vld [vmem:[#allocation2] sm:$0xff] }
 0x1eb   : >> { %v945_v23 = vpop.permute.xlu0 %944  ;;  %1334 = vmatmul.mubr.bf16.vlgmr.msra.gmra.mrb[8].mxu1 %v1024_v34  ;;  %v1032_v37 = vld [vmem:[#allocation2] sm:$0xf0]  ;;  %v3205_v34 = vld [vmem:[#allocation94_spill] sm:$0xff] }
 0x1ec   : >> { %958 = vst.msk [vmem:[#allocation2 + $0x40] sm:$0xf] %vm957_vm8, %v945_v23  ;;  %1444 = vmatpush1.bf16.msra.mxu1 %v1698_v36  ;;  %1695 = vmatprep.mubr.msk.bf16.mxu1 %vm916_vm5, %v2912_v56  ;;  %v943_v31 = vpop.permute.xlu1 %942  ;;  %v1046_v4 = vrot.slane %v1032_v37, 4  ;;  %v3206_v23 = vld [vmem:[#allocation93_spill] sm:$0xff]  ;;  %v3208_v37 = vld [vmem:[#allocation95_spill] sm:$0xff] }
 0x1ed   : >> { %1445 = vmatprep.subr.bf16.mxu1 %v3182_v30  ;;  %956 = vst.msk [vmem:[#allocation2 + $0x30] sm:$0xff] %vm953_vm7, %v943_v31  ;;  %v1705_v29 = vcombine.low %v3206_v23, %v3205_v34  ;;  %v3207_v31 = vld [vmem:[#allocation96_spill] sm:$0xff] }
 0x1ee   : >> { %v1706_v15 = vcombine.low %v3208_v37, %v3207_v31 }
 0x1ef   : >> { %v2939_v38 = vld [vmem:[#allocation2 + $0x10] sm:$0xff] }
 0x1f0   : >> { %v1047_v5 = vrot.slane %v2939_v38, 4  ;;  %1446 = vmatpush1.bf16.msra.mxu1 %v1699_v21  ;;  %v1028_v9 = vld [vmem:[#allocation2 + $0x20] sm:$0xff] }
 0x1f1   : >> { %1447 = vmatprep.subr.bf16.mxu1 %v3182_v30  ;;  %v1052_v57 = vrot.slane %v1028_v9, 4 }
 0x1f2   : >> { %v1048_v8 = vsel %vm902_vm4, %v1046_v4, %v1047_v5  ;;  %v3209_v4 = vld [vmem:[#allocation97_spill] sm:$0xff] }
 0x1f3   : >> { %1185 = vmatmul.mubr.bf16.vlgmr.msra.gmra.mrb[16].mxu0 %v1048_v8  ;;  %1342 = vmatmul.mubr.bf16.gmra.mrb[12].mxu1 %v2939_v38  ;;  %v1053_v12 = vsel %vm902_vm4, %v1047_v5, %v1052_v57  ;;  %v1034_v22 = vld [vmem:[#allocation2 + $0x40] sm:$0xf] }
 0x1f4   : >> { %1679 = vmatprep.mubr.msk.bf16.mxu0 %vm916_vm5, %v1055_v25  ;;  %1448 = vmatpush1.bf16.msra.mxu1 %v1700_v13  ;;  %v1030_v18 = vld [vmem:[#allocation2 + $0x30] sm:$0xff]  ;;  %v1060_v21 = vrot.slane %v1034_v22, 4  ;;  %v1708_v13 = vcombine.low %v3211_v10, %v3210_v26  ;;  %v3212_v8 = vld [vmem:[#allocation101_spill] sm:$0xff]  ;;  %v3213_v25 = vld [vmem:[#allocation100_spill] sm:$0xff] }
 0x1f5   : >> { %1696 = vmatprep.mubr.msk.bf16.mxu1 %vm916_vm5, %v2931_v14  ;;  %1449 = vmatprep.subr.bf16.mxu1 %v3182_v30  ;;  %v1056_v7 = vrot.slane %v1030_v18, 4  ;;  %v1709_v1 = vcombine.low %v3213_v25, %v3212_v8 }
 0x1f7   : >> { %v1057_v36 = vsel %vm902_vm4, %v1052_v57, %v1056_v7  ;;  %v1061_v5 = vsel %vm902_vm4, %v1056_v7, %v1060_v21 }
 0x1f8   : >> { %1450 = vmatpush1.bf16.msra.mxu1 %v1701_v6  ;;  %v1366_v6 = vld [vmem:[#allocation2 + $0x40] sm:$0xff] }
 0x1f9   : >> { %1451 = vmatprep.subr.bf16.mxu1 %v3182_v30 }
 0x1fb   : >> { %1193 = vmatmul.mubr.bf16.gmra.mrb[20].mxu0 %v1053_v12  ;;  %1350 = vmatmul.mubr.bf16.gmra.mrb[16].mxu1 %v1028_v9 }
 0x1fc   : >> { %1680 = vmatprep.mubr.msk.bf16.mxu0 %vm916_vm5, %v1059_v16  ;;  %1452 = vmatpush1.bf16.msra.mxu1 %v1702_v17 }
 0x1fd   : >> { %1697 = vmatprep.mubr.msk.bf16.mxu1 %vm916_vm5, %v1031_v20  ;;  %1453 = vmatprep.subr.bf16.mxu1 %v3182_v30 }
 0x200   : >> { %1454 = vmatpush1.bf16.msra.mxu1 %v1703_v2 }
 0x201   : >> { %1455 = vmatprep.subr.bf16.mxu1 %v3182_v30 }
 0x203   : >> { %1201 = vmatmul.mubr.bf16.gmra.mrb[24].mxu0 %v1057_v36  ;;  %1358 = vmatmul.mubr.bf16.gmra.mrb[20].mxu1 %v1030_v18 }
 0x204   : >> { %1681 = vmatprep.mubr.msk.bf16.mxu0 %vm916_vm5, %v1063_v35  ;;  %1456 = vmatpush1.bf16.msra.mxu1 %v1704_v3 }
 0x205   : >> { %1710 = vmatprep.mubr.msk.bf16.mxu1 %vm916_vm5, %v2912_v56  ;;  %1457 = vmatprep.subr.bf16.mxu1 %v3182_v30  ;;  %v1707_v56 = vcombine.low %v3209_v4, %v2562_v55 }
 0x208   : >> { %1458 = vmatpush1.bf16.msra.mxu1 %v1705_v29 }
 0x209   : >> { %1459 = vmatprep.subr.bf16.mxu1 %v3182_v30 }
 0x20b   : >> { %1209 = vmatmul.mubr.bf16.gmra.mrb[28].mxu0 %v1061_v5 }
 0x20c   : >> { %1460 = vmatpush1.bf16.msra.mxu1 %v1706_v15 }
 0x20d   : >> { %1461 = vmatprep.subr.bf16.mxu1 %v3182_v30 }
 0x210   : >> { %1462 = vmatpush1.bf16.msra.mxu1 %v1707_v56 }
 0x211   : >> { %1463 = vmatprep.subr.bf16.mxu1 %v3182_v30 }
 0x214   : >> { %1464 = vmatpush1.bf16.msra.mxu1 %v1708_v13 }
 0x215   : >> { %1465 = vmatprep.subr.bf16.mxu1 %v3182_v30 }
 0x218   : >> { %1466 = vmatpush1.bf16.msra.mxu1 %v1709_v1 }
 0x21b   : >> { %1476 = vmatmul.mubr.bf16.vlgmr.msra.gmra.mrb[8].mxu1 %v2939_v38 }
 0x21c   : >> { %1711 = vmatprep.mubr.msk.bf16.mxu1 %vm916_vm5, %v2931_v14 }
 0x223   : >> { %1484 = vmatmul.mubr.bf16.gmra.mrb[12].mxu1 %v1028_v9 }
 0x224   : >> { %1712 = vmatprep.mubr.msk.bf16.mxu1 %vm916_vm5, %v1031_v20 }
 0x22b   : >> { %1492 = vmatmul.mubr.bf16.gmra.mrb[16].mxu1 %v1030_v18 }
 0x22c   : >> { %1713 = vmatprep.mubr.msk.bf16.mxu1 %vm916_vm5, %v1367_v32 }
 0x233   : >> { %1500 = vmatmul.mubr.bf16.gmra.mrb[20].mxu1 %v1366_v6 }
 0x2c6   : >> { %v1186_v57 = vpop.f32.mrb[16].mxu0 }
 0x2c7   : >> { %v1188_v27 = vpop.f32.mrb[17].mxu0 }
 0x2c8   : >> { %v1189_v28 = vpop.f32.mrb[18].mxu0 }
 0x2c9   : >> { %v1191_v58 = vpop.f32.mrb[19].mxu0 }
 0x2ce   : >> { %v1194_v30 = vpop.f32.mrb[20].mxu0 }
 0x2cf   : >> { %v1196_v17 = vpop.f32.mrb[21].mxu0 }
 0x2d0   : >> { %v1197_v12 = vpop.f32.mrb[22].mxu0 }
 0x2d1   : >> { %v1199_v38 = vpop.f32.mrb[23].mxu0 }
 0x2d6   : >> { %v1202_v14 = vpop.f32.mrb[24].mxu0 }
 0x2d7   : >> { %v1204_v9 = vpop.f32.mrb[25].mxu0 }
 0x2d8   : >> { %v1205_v16 = vpop.f32.mrb[26].mxu0 }
 0x2d9   : >> { %v1207_v20 = vpop.f32.mrb[27].mxu0 }
 0x2de   : >> { %v1210_v18 = vpop.f32.mrb[28].mxu0 }
 0x2df   : >> { %v1212_v24 = vpop.f32.mrb[29].mxu0 }
 0x2e0   : >> { %v1213_v62 = vpop.f32.mrb[30].mxu0 }
 0x2e1   : >> { %v1215_v2 = vpop.f32.mrb[31].mxu0 }
 0x2ee   : >> { %v1477_v7 = vpop.f32.mrb[8].mxu1 }
 0x2ef   : >> { %v1868_v11 = vadd.f32 %v1477_v7, %v1186_v57  ;;  %v1479_v33 = vpop.f32.mrb[9].mxu1 }
 0x2f0   : >> { %v1480_v19 = vpop.f32.mrb[10].mxu1 }
 0x2f1   : >> { %v1869_v3 = vadd.f32 %v1480_v19, %v1189_v28  ;;  %v1482_v0 = vpop.f32.mrb[11].mxu1 }
 0x2f3   : >> { %v1740_v36 = vpack.c.bf16 %v1869_v3, %v1868_v11 }
 0x2f5   : >> { %1741 = vst [vmem:[%s1549_s15] sm:$0xff] %v1740_v36  }
 0x2f6   : >> { %v1485_v35 = vpop.f32.mrb[12].mxu1 }
 0x2f7   : >> { %v1870_v34 = vadd.f32 %v1485_v35, %v1194_v30  ;;  %v1487_v23 = vpop.f32.mrb[13].mxu1 }
 0x2f8   : >> { %v1488_v29 = vpop.f32.mrb[14].mxu1 }
 0x2f9   : >> { %v1871_v22 = vadd.f32 %v1488_v29, %v1197_v12  ;;  %v1490_v21 = vpop.f32.mrb[15].mxu1 }
 0x2fb   : >> { %v1745_v31 = vpack.c.bf16 %v1871_v22, %v1870_v34 }
 0x2fd   : >> { %1757 = vst [vmem:[%s1549_s15 + $0x8] sm:$0xff] %v1745_v31  }
 0x2fe   : >> { %v1493_v37 = vpop.f32.mrb[16].mxu1 }
 0x2ff   : >> { %v1872_v15 = vadd.f32 %v1493_v37, %v1202_v14  ;;  %v1495_v5 = vpop.f32.mrb[17].mxu1 }
 0x300   : >> { %v1496_v4 = vpop.f32.mrb[18].mxu1 }
 0x301   : >> { %v1873_v56 = vadd.f32 %v1496_v4, %v1205_v16  ;;  %v1498_v26 = vpop.f32.mrb[19].mxu1 }
 0x303   : >> { %v1750_v10 = vpack.c.bf16 %v1873_v56, %v1872_v15 }
 0x305   : >> { %1758 = vst [vmem:[%s1549_s15 + $0x10] sm:$0xff] %v1750_v10  }
 0x306   : >> { %v1501_v13 = vpop.f32.mrb[20].mxu1 }
 0x307   : >> { %v1874_v8 = vadd.f32 %v1501_v13, %v1210_v18  ;;  %v1503_v25 = vpop.f32.mrb[21].mxu1  ;;  %364 = sbr.rel (!%p362_p4) target bundleno = 67 (0x43), region = 79 }
 0x308   : >> { %v1504_v1 = vpop.f32.mrb[22].mxu1 }
 0x309   : >> { %v1875_v32 = vadd.f32 %v1504_v1, %v1213_v62  ;;  %v1506_v6 = vpop.f32.mrb[23].mxu1 }
 0x30b   : >> { %v1755_v57 = vpack.c.bf16 %v1875_v32, %v1874_v8 }
 0x30d   : >> { %1759 = vst [vmem:[%s1549_s15 + $0x18] sm:$0xff] %v1755_v57  }
 0x30e PF: > { %s15_s18 = sadd.s32 1, %s1925_s18  }
 0x30f   : > { %p12_p5 = scmp.ge.s32.totalorder %s15_s18, 4  }
 0x311   :  { %14 = sbr.rel (!%p12_p5) target bundleno = 1 (0x1), region = 90 }

</bundles_post_ra>
